<compile_context>
chip_gen: v7x
topology: tpu7x:2x2x1
jax: 0.10.0
libtpu: 0.0.40
codegen_flags: <defaults>
</compile_context>

<pallas_src>
import jax
import jax.numpy as jnp
from jax import lax
from jax.experimental import pallas as pl
from jax.experimental.pallas import tpu as pltpu


def _round_up(n, m):
    return ((n + m - 1) // m) * m


def dc_kernel(lam_ref,
              xr_ref, xi_ref, x0r_ref, x0i_ref,
              cr_ref, ci_ref, m2_ref,
              fhr_ref, fhi_ref, fwcat_ref,
              outr_ref, outi_ref,
              gr_ref, gi_ref):
    t = pl.program_id(1)

    @pl.when(t == 0)
    def _init():
        gr_ref[...] = jnp.zeros_like(gr_ref)
        gi_ref[...] = jnp.zeros_like(gi_ref)

    xr = xr_ref[0]                       # (H, W) f32
    xi = xi_ref[0]
    cr = cr_ref[0]                       # (CT, H, W) f32
    ci = ci_ref[0]
    CT, H, W = cr.shape

    fhr = fhr_ref[...]                   # (H, H) bf16 ortho DFT (rows axis)
    fhi = fhi_ref[...]
    fwcat = fwcat_ref[...]               # (W, 2W) bf16 = [Fw_re | Fw_im]
    m2 = m2_ref[...]                     # (H, W) f32 = mask^2 (fwd + adj mask)

    bf16 = jnp.bfloat16
    f32 = jnp.float32
    dn_b = (((2,), (1,)), ((0,), (0,)))  # (c,h,k)@(c,k,v) -> (c,h,v)

    # y = coil * x  (complex elementwise; x broadcast over the coil tile)
    yr = (cr * xr[None] - ci * xi[None]).reshape(CT * H, W)
    yi = (cr * xi[None] + ci * xr[None]).reshape(CT * H, W)

    # ---- forward W transform: T = y @ Fw (2 dots, N = 2W) -----------------
    ur = jnp.dot(yr.astype(bf16), fwcat, preferred_element_type=f32)   # (CT*H, 2W)
    ui = jnp.dot(yi.astype(bf16), fwcat, preferred_element_type=f32)
    tr = ur[:, :W] - ui[:, W:]
    ti = ur[:, W:] + ui[:, :W]

    # ---- forward H transform: K = Fh @ T (batched left-multiply) ----------
    fhr_b = jnp.broadcast_to(fhr, (CT, H, H))
    fhi_b = jnp.broadcast_to(fhi, (CT, H, H))
    tcat = jnp.concatenate([tr.astype(bf16), ti.astype(bf16)],
                           axis=-1).reshape(CT, H, 2 * W)
    pr = lax.dot_general(fhr_b, tcat, dn_b, preferred_element_type=f32)  # (CT,H,2W)
    pi = lax.dot_general(fhi_b, tcat, dn_b, preferred_element_type=f32)
    kr = pr[..., :W] - pi[..., W:]
    ki = pr[..., W:] + pi[..., :W]

    # ---- k-space mask (fwd mask * adj mask = mask^2) -----------------------
    kr = kr * m2[None]
    ki = ki * m2[None]

    # ---- adjoint H transform: P = conj(Fh) @ Km (conj folded into combine) -
    kcat = jnp.concatenate([kr.astype(bf16), ki.astype(bf16)], axis=-1)  # (CT,H,2W)
    qr = lax.dot_general(fhr_b, kcat, dn_b, preferred_element_type=f32)
    qi = lax.dot_general(fhi_b, kcat, dn_b, preferred_element_type=f32)
    pr2 = (qr[..., :W] + qi[..., W:]).reshape(CT * H, W)
    pi2 = (qr[..., W:] - qi[..., :W]).reshape(CT * H, W)

    # ---- adjoint W transform: z = P @ conj(Fw) ------------------------------
    vr = jnp.dot(pr2.astype(bf16), fwcat, preferred_element_type=f32)   # (CT*H, 2W)
    vi = jnp.dot(pi2.astype(bf16), fwcat, preferred_element_type=f32)
    zr = (vr[:, :W] + vi[:, W:]).reshape(CT, H, W)
    zi = (vi[:, :W] - vr[:, W:]).reshape(CT, H, W)

    # ---- accumulate conj(coil) * z over this coil tile ----------------------
    gr_ref[...] += jnp.sum(cr * zr + ci * zi, axis=0)
    gi_ref[...] += jnp.sum(cr * zi - ci * zr, axis=0)

    # ---- finalize: next_x = x - lam * (A.adj(A.fwd(x)) - x0) ----------------
    @pl.when(t == pl.num_programs(1) - 1)
    def _fin():
        lam = lam_ref[0]
        outr_ref[0] = xr - lam * (gr_ref[...] - x0r_ref[0])
        outi_ref[0] = xi - lam * (gi_ref[...] - x0i_ref[0])


def _ortho_dft_matrices(n, n_pad):
    """(n_pad, n_pad) bf16 ortho DFT with the true (n, n) matrix in the corner."""
    k = jnp.arange(n, dtype=jnp.int32)
    jk = (k[:, None] * k[None, :]) % n          # integer mod before f32 angle
    ang = (-2.0 * jnp.pi / n) * jk.astype(jnp.float32)
    scale = 1.0 / jnp.sqrt(jnp.float32(n))
    fr = jnp.cos(ang) * scale
    fi = jnp.sin(ang) * scale
    pad = ((0, n_pad - n), (0, n_pad - n))
    return (jnp.pad(fr, pad).astype(jnp.bfloat16),
            jnp.pad(fi, pad).astype(jnp.bfloat16))


def _pad2(a, hp, wp):
    """Zero-pad the last two dims of `a` to (hp, wp)."""
    pads = [(0, 0)] * (a.ndim - 2) + [(0, hp - a.shape[-2]), (0, wp - a.shape[-1])]
    return jnp.pad(a, pads)


def _vmem_limit_bytes():
    cap = None
    try:
        cap = getattr(pltpu.get_tpu_info(), "vmem_capacity_bytes", None)
    except Exception:
        cap = None
    if not cap:
        cap = 64 << 20                  # conservative fallback (v7x per-core)
    return int(min(cap * 3 // 4, 100 << 20))


def data_consistency(curr_x, x0, coil, mask, lam, *, coil_tile=None):
    """curr_x, x0: complex64 (B,H,W); coil: complex64 (B,C,H,W);
    mask: float32 (H,W); lam: float32 scalar (the nn.Parameter)."""
    B, H, W = curr_x.shape
    C = coil.shape[1]

    # Lane/sublane padding: W up to one full lane group when narrower than 128
    # (lane-dense stores / aligned concat-slices); H to a sublane multiple.
    # Larger non-128-multiple W is left alone (extra matmul FLOPs would exceed
    # the store-path win).
    Hp = _round_up(H, 8)
    Wp = _round_up(W, 128) if W < 128 else W

    vmem_limit = _vmem_limit_bytes()

    if coil_tile is None:
        # Budget the full per-step working set: ~2x double-buffered coil input
        # plus the live f32/bf16 (CT*H, W)-class intermediates (~24 planes).
        plane = Hp * Wp * 4
        per_coil = 24 * plane
        cap_ct = max(1, (vmem_limit * 3 // 5) // per_coil)
        coil_tile = max(d for d in range(1, C + 1) if C % d == 0 and d <= cap_ct)
    assert C % coil_tile == 0
    nct = C // coil_tile

    xr = _pad2(jnp.real(curr_x).astype(jnp.float32), Hp, Wp)
    xi = _pad2(jnp.imag(curr_x).astype(jnp.float32), Hp, Wp)
    x0r = _pad2(jnp.real(x0).astype(jnp.float32), Hp, Wp)
    x0i = _pad2(jnp.imag(x0).astype(jnp.float32), Hp, Wp)
    cr = _pad2(jnp.real(coil).astype(jnp.float32), Hp, Wp)
    ci = _pad2(jnp.imag(coil).astype(jnp.float32), Hp, Wp)
    m2 = _pad2((mask * mask).astype(jnp.float32), Hp, Wp)

    fhr, fhi = _ortho_dft_matrices(H, Hp)
    fwr, fwi = _ortho_dft_matrices(W, Wp)
    fwcat = jnp.concatenate([fwr, fwi], axis=1)            # (Wp, 2*Wp) bf16
    lam_arr = jnp.asarray(lam, dtype=jnp.float32).reshape((1,))

    img_spec = pl.BlockSpec((1, Hp, Wp), lambda b, t: (b, 0, 0))
    coil_spec = pl.BlockSpec((1, coil_tile, Hp, Wp), lambda b, t: (b, t, 0, 0))

    def full2d(shape):
        return pl.BlockSpec(shape, lambda b, t: (0, 0))

    outr, outi = pl.pallas_call(
        dc_kernel,
        out_shape=(jax.ShapeDtypeStruct((B, Hp, Wp), jnp.float32),
                   jax.ShapeDtypeStruct((B, Hp, Wp), jnp.float32)),
        grid=(B, nct),
        in_specs=[
            pl.BlockSpec(memory_space=pltpu.MemorySpace.SMEM),   # lam (scalar)
            img_spec, img_spec, img_spec, img_spec,              # xr xi x0r x0i
            coil_spec, coil_spec,                                # cr ci
            full2d((Hp, Wp)),                                    # mask^2
            full2d((Hp, Hp)), full2d((Hp, Hp)),                  # Fh re / im
            full2d((Wp, 2 * Wp)),                                # [Fw_re | Fw_im]
        ],
        out_specs=(img_spec, img_spec),
        scratch_shapes=[pltpu.VMEM((Hp, Wp), jnp.float32),
                        pltpu.VMEM((Hp, Wp), jnp.float32)],
        compiler_params=pltpu.CompilerParams(
            dimension_semantics=("parallel", "arbitrary"),
            vmem_limit_bytes=vmem_limit),
    )(lam_arr, xr, xi, x0r, x0i, cr, ci, m2, fhr, fhi, fwcat)

    return outr[:, :H, :W] + 1j * outi[:, :H, :W]


def reference(curr_x, x0, coil, mask, lam):
    """Pure-JAX reference of the same SENSE data-consistency step."""
    y = coil * curr_x[:, None, :, :]                       # coil * x
    k = mask * jnp.fft.fft2(y, norm="ortho")               # A.fwd
    z = jnp.fft.ifft2(mask * k, norm="ortho")
    aax = jnp.sum(jnp.conj(coil) * z, axis=1)              # A.adj
    grad = aax - x0
    return curr_x - lam * grad


if __name__ == "__main__":
    B, C, H, W = 2, 4, 16, 16
    key = jax.random.PRNGKey(0)
    ks = jax.random.split(key, 7)

    curr_x = (jax.random.normal(ks[0], (B, H, W))
              + 1j * jax.random.normal(ks[1], (B, H, W))).astype(jnp.complex64)
    x0 = (jax.random.normal(ks[2], (B, H, W))
          + 1j * jax.random.normal(ks[3], (B, H, W))).astype(jnp.complex64)
    coil = (jax.random.normal(ks[4], (B, C, H, W))
            + 1j * jax.random.normal(ks[5], (B, C, H, W))).astype(jnp.complex64)
    mask = (jax.random.uniform(ks[6], (H, W)) > 0.5).astype(jnp.float32)
    lam = jnp.float32(0.01)   # matches nn.Parameter(torch.tensor(0.01))

    # coil_tile=2 exercises the coil-reduction grid axis (nct=2) and the
    # lane-padding path (W=16 -> 128).
    out = data_consistency(curr_x, x0, coil, mask, lam, coil_tile=2)
    out = jax.block_until_ready(out)

    ref = reference(curr_x, x0, coil, mask, lam)
    max_err = float(jnp.max(jnp.abs(out - ref)))
    # bf16 MXU operands (f32 accumulation) leave ~1e-4-level error after the
    # lam=0.01 damping; 2e-3 still catches any structural/sign mistake.
    assert jnp.allclose(out, ref, atol=2e-3, rtol=2e-3), max_err

    print("KERNEL_OK")
</pallas_src>

<mosaic_0001>
module attributes {stable_mosaic.version = 11 : i64} {
  func.func @dc_kernel(%arg0: i32, %arg1: i32, %arg2: memref<1xf32, #tpu.memory_space<smem>>, %arg3: memref<1x16x128xf32, #tpu.memory_space<vmem>>, %arg4: memref<1x16x128xf32, #tpu.memory_space<vmem>>, %arg5: memref<1x16x128xf32, #tpu.memory_space<vmem>>, %arg6: memref<1x16x128xf32, #tpu.memory_space<vmem>>, %arg7: memref<1x2x16x128xf32, #tpu.memory_space<vmem>>, %arg8: memref<1x2x16x128xf32, #tpu.memory_space<vmem>>, %arg9: memref<16x128xf32, #tpu.memory_space<vmem>>, %arg10: memref<16x16xbf16, #tpu.memory_space<vmem>>, %arg11: memref<16x16xbf16, #tpu.memory_space<vmem>>, %arg12: memref<128x256xbf16, #tpu.memory_space<vmem>>, %arg13: memref<1x16x128xf32, #tpu.memory_space<vmem>>, %arg14: memref<1x16x128xf32, #tpu.memory_space<vmem>>, %arg15: memref<16x128xf32, #tpu.memory_space<vmem>>, %arg16: memref<16x128xf32, #tpu.memory_space<vmem>>) attributes {dimension_semantics = [#tpu.dimension_semantics<parallel>, #tpu.dimension_semantics<arbitrary>], iteration_bounds = array<i64: 2, 2>, scalar_prefetch = 0 : i64, scratch_operands = 2 : i64, tpu.core_type = #tpu.core_type<tc>, window_params = [{transform_indices = @transform_0, window_bounds = array<i64: 1>}, {transform_indices = @transform_1, window_bounds = array<i64: 1, 16, 128>}, {transform_indices = @transform_2, window_bounds = array<i64: 1, 16, 128>}, {transform_indices = @transform_3, window_bounds = array<i64: 1, 16, 128>}, {transform_indices = @transform_4, window_bounds = array<i64: 1, 16, 128>}, {transform_indices = @transform_5, window_bounds = array<i64: 1, 2, 16, 128>}, {transform_indices = @transform_6, window_bounds = array<i64: 1, 2, 16, 128>}, {pipeline_mode = #tpu.pipeline_mode<synchronous>, transform_indices = @transform_7, window_bounds = array<i64: 16, 128>}, {pipeline_mode = #tpu.pipeline_mode<synchronous>, transform_indices = @transform_8, window_bounds = array<i64: 16, 16>}, {pipeline_mode = #tpu.pipeline_mode<synchronous>, transform_indices = @transform_9, window_bounds = array<i64: 16, 16>}, {pipeline_mode = #tpu.pipeline_mode<synchronous>, transform_indices = @transform_10, window_bounds = array<i64: 128, 256>}, {transform_indices = @transform_11, window_bounds = array<i64: 1, 16, 128>}, {transform_indices = @transform_12, window_bounds = array<i64: 1, 16, 128>}]} {
    %c0_i32 = arith.constant 0 : i32
    %0 = arith.cmpi eq, %arg1, %c0_i32 : i32
    %1 = arith.extui %0 : i1 to i32
    %c0_i32_0 = arith.constant 0 : i32
    %2 = arith.cmpi ne, %1, %c0_i32_0 : i32
    scf.if %2 {
      %cst_40 = arith.constant 0.000000e+00 : f32
      %105 = vector.broadcast %cst_40 : f32 to vector<16x128xf32>
      %c0_41 = arith.constant 0 : index
      %c0_42 = arith.constant 0 : index
      %106 = vector.load %arg15[%c0_41, %c0_42] : memref<16x128xf32, #tpu.memory_space<vmem>>, vector<16x128xf32>
      tpu.vector_store %arg15[%c0_41, %c0_42], %105 {strides = array<i32>} : memref<16x128xf32, #tpu.memory_space<vmem>>, vector<16x128xf32>,
      %cst_43 = arith.constant 0.000000e+00 : f32
      %107 = vector.broadcast %cst_43 : f32 to vector<16x128xf32>
      %c0_44 = arith.constant 0 : index
      %c0_45 = arith.constant 0 : index
      %108 = vector.load %arg16[%c0_44, %c0_45] : memref<16x128xf32, #tpu.memory_space<vmem>>, vector<16x128xf32>
      tpu.vector_store %arg16[%c0_44, %c0_45], %107 {strides = array<i32>} : memref<16x128xf32, #tpu.memory_space<vmem>>, vector<16x128xf32>,
    } else {
    }
    %c0 = arith.constant 0 : index
    %c0_1 = arith.constant 0 : index
    %c0_2 = arith.constant 0 : index
    %3 = vector.load %arg3[%c0, %c0_1, %c0_2] : memref<1x16x128xf32, #tpu.memory_space<vmem>>, vector<1x16x128xf32>
    %4 = vector.shape_cast %3 : vector<1x16x128xf32> to vector<16x128xf32>
    %c0_3 = arith.constant 0 : index
    %c0_4 = arith.constant 0 : index
    %c0_5 = arith.constant 0 : index
    %5 = vector.load %arg4[%c0_3, %c0_4, %c0_5] : memref<1x16x128xf32, #tpu.memory_space<vmem>>, vector<1x16x128xf32>
    %6 = vector.shape_cast %5 : vector<1x16x128xf32> to vector<16x128xf32>
    %c0_6 = arith.constant 0 : index
    %c0_7 = arith.constant 0 : index
    %c0_8 = arith.constant 0 : index
    %c0_9 = arith.constant 0 : index
    %7 = vector.load %arg7[%c0_6, %c0_7, %c0_8, %c0_9] : memref<1x2x16x128xf32, #tpu.memory_space<vmem>>, vector<1x2x16x128xf32>
    %8 = vector.shape_cast %7 : vector<1x2x16x128xf32> to vector<2x16x128xf32>
    %c0_10 = arith.constant 0 : index
    %c0_11 = arith.constant 0 : index
    %c0_12 = arith.constant 0 : index
    %c0_13 = arith.constant 0 : index
    %9 = vector.load %arg8[%c0_10, %c0_11, %c0_12, %c0_13] : memref<1x2x16x128xf32, #tpu.memory_space<vmem>>, vector<1x2x16x128xf32>
    %10 = vector.shape_cast %9 : vector<1x2x16x128xf32> to vector<2x16x128xf32>
    %c0_14 = arith.constant 0 : index
    %c0_15 = arith.constant 0 : index
    %11 = vector.load %arg10[%c0_14, %c0_15] : memref<16x16xbf16, #tpu.memory_space<vmem>>, vector<16x16xbf16>
    %c0_16 = arith.constant 0 : index
    %c0_17 = arith.constant 0 : index
    %12 = vector.load %arg11[%c0_16, %c0_17] : memref<16x16xbf16, #tpu.memory_space<vmem>>, vector<16x16xbf16>
    %c0_18 = arith.constant 0 : index
    %c0_19 = arith.constant 0 : index
    %13 = vector.load %arg12[%c0_18, %c0_19] : memref<128x256xbf16, #tpu.memory_space<vmem>>, vector<128x256xbf16>
    %c0_20 = arith.constant 0 : index
    %c0_21 = arith.constant 0 : index
    %14 = vector.load %arg9[%c0_20, %c0_21] : memref<16x128xf32, #tpu.memory_space<vmem>>, vector<16x128xf32>
    %15 = vector.shape_cast %4 : vector<16x128xf32> to vector<1x16x128xf32>
    %16 = vector.broadcast %15 : vector<1x16x128xf32> to vector<2x16x128xf32>
    %17 = arith.mulf %8, %16 : vector<2x16x128xf32>
    %18 = vector.shape_cast %6 : vector<16x128xf32> to vector<1x16x128xf32>
    %19 = vector.broadcast %18 : vector<1x16x128xf32> to vector<2x16x128xf32>
    %20 = arith.mulf %10, %19 : vector<2x16x128xf32>
    %21 = arith.subf %17, %20 : vector<2x16x128xf32>
    %22 = vector.shape_cast %21 : vector<2x16x128xf32> to vector<32x128xf32>
    %23 = vector.shape_cast %6 : vector<16x128xf32> to vector<1x16x128xf32>
    %24 = vector.broadcast %23 : vector<1x16x128xf32> to vector<2x16x128xf32>
    %25 = arith.mulf %8, %24 : vector<2x16x128xf32>
    %26 = vector.shape_cast %4 : vector<16x128xf32> to vector<1x16x128xf32>
    %27 = vector.broadcast %26 : vector<1x16x128xf32> to vector<2x16x128xf32>
    %28 = arith.mulf %10, %27 : vector<2x16x128xf32>
    %29 = arith.addf %25, %28 : vector<2x16x128xf32>
    %30 = vector.shape_cast %29 : vector<2x16x128xf32> to vector<32x128xf32>
    %31 = arith.truncf %22 : vector<32x128xf32> to vector<32x128xbf16>
    %cst = arith.constant dense<0.000000e+00> : vector<32x256xf32>
    %32 = tpu.matmul %31, %13, %cst {dimension_numbers = #tpu.dot_dimension_numbers<[1], [0], [0], [1], [0, 0, 1, 1], [], []>} : vector<32x128xbf16>, vector<128x256xbf16>, vector<32x256xf32> -> vector<32x256xf32>
    %33 = arith.truncf %30 : vector<32x128xf32> to vector<32x128xbf16>
    %cst_22 = arith.constant dense<0.000000e+00> : vector<32x256xf32>
    %34 = tpu.matmul %33, %13, %cst_22 {dimension_numbers = #tpu.dot_dimension_numbers<[1], [0], [0], [1], [0, 0, 1, 1], [], []>} : vector<32x128xbf16>, vector<128x256xbf16>, vector<32x256xf32> -> vector<32x256xf32>
    %35 = vector.extract_strided_slice %32 {offsets = [0, 0], sizes = [32, 128], strides = [1, 1]} : vector<32x256xf32> to vector<32x128xf32>
    %36 = vector.extract_strided_slice %34 {offsets = [0, 128], sizes = [32, 128], strides = [1, 1]} : vector<32x256xf32> to vector<32x128xf32>
    %37 = arith.subf %35, %36 : vector<32x128xf32>
    %38 = vector.extract_strided_slice %32 {offsets = [0, 128], sizes = [32, 128], strides = [1, 1]} : vector<32x256xf32> to vector<32x128xf32>
    %39 = vector.extract_strided_slice %34 {offsets = [0, 0], sizes = [32, 128], strides = [1, 1]} : vector<32x256xf32> to vector<32x128xf32>
    %40 = arith.addf %38, %39 : vector<32x128xf32>
    %41 = vector.shape_cast %11 : vector<16x16xbf16> to vector<1x16x16xbf16>
    %42 = vector.broadcast %41 : vector<1x16x16xbf16> to vector<2x16x16xbf16>
    %43 = vector.shape_cast %12 : vector<16x16xbf16> to vector<1x16x16xbf16>
    %44 = vector.broadcast %43 : vector<1x16x16xbf16> to vector<2x16x16xbf16>
    %45 = arith.truncf %37 : vector<32x128xf32> to vector<32x128xbf16>
    %46 = arith.truncf %40 : vector<32x128xf32> to vector<32x128xbf16>
    %47 = tpu.concatenate %45, %46 in 1 : vector<32x128xbf16>, vector<32x128xbf16> -> vector<32x256xbf16>
    %48 = vector.shape_cast %47 : vector<32x256xbf16> to vector<2x16x256xbf16>
    %cst_23 = arith.constant dense<0.000000e+00> : vector<2x16x256xf32>
    %49 = tpu.matmul %42, %48, %cst_23 {dimension_numbers = #tpu.dot_dimension_numbers<[2], [1], [1], [2], [0, 0, 0, 1, 1, 2], [0], [0]>} : vector<2x16x16xbf16>, vector<2x16x256xbf16>, vector<2x16x256xf32> -> vector<2x16x256xf32>
    %cst_24 = arith.constant dense<0.000000e+00> : vector<2x16x256xf32>
    %50 = tpu.matmul %44, %48, %cst_24 {dimension_numbers = #tpu.dot_dimension_numbers<[2], [1], [1], [2], [0, 0, 0, 1, 1, 2], [0], [0]>} : vector<2x16x16xbf16>, vector<2x16x256xbf16>, vector<2x16x256xf32> -> vector<2x16x256xf32>
    %51 = vector.extract_strided_slice %49 {offsets = [0, 0, 0], sizes = [2, 16, 128], strides = [1, 1, 1]} : vector<2x16x256xf32> to vector<2x16x128xf32>
    %52 = vector.extract_strided_slice %50 {offsets = [0, 0, 128], sizes = [2, 16, 128], strides = [1, 1, 1]} : vector<2x16x256xf32> to vector<2x16x128xf32>
    %53 = arith.subf %51, %52 : vector<2x16x128xf32>
    %54 = vector.extract_strided_slice %49 {offsets = [0, 0, 128], sizes = [2, 16, 128], strides = [1, 1, 1]} : vector<2x16x256xf32> to vector<2x16x128xf32>
    %55 = vector.extract_strided_slice %50 {offsets = [0, 0, 0], sizes = [2, 16, 128], strides = [1, 1, 1]} : vector<2x16x256xf32> to vector<2x16x128xf32>
    %56 = arith.addf %54, %55 : vector<2x16x128xf32>
    %57 = vector.shape_cast %14 : vector<16x128xf32> to vector<1x16x128xf32>
    %58 = vector.broadcast %57 : vector<1x16x128xf32> to vector<2x16x128xf32>
    %59 = arith.mulf %53, %58 : vector<2x16x128xf32>
    %60 = vector.shape_cast %14 : vector<16x128xf32> to vector<1x16x128xf32>
    %61 = vector.broadcast %60 : vector<1x16x128xf32> to vector<2x16x128xf32>
    %62 = arith.mulf %56, %61 : vector<2x16x128xf32>
    %63 = arith.truncf %59 : vector<2x16x128xf32> to vector<2x16x128xbf16>
    %64 = arith.truncf %62 : vector<2x16x128xf32> to vector<2x16x128xbf16>
    %65 = tpu.concatenate %63, %64 in 2 : vector<2x16x128xbf16>, vector<2x16x128xbf16> -> vector<2x16x256xbf16>
    %cst_25 = arith.constant dense<0.000000e+00> : vector<2x16x256xf32>
    %66 = tpu.matmul %42, %65, %cst_25 {dimension_numbers = #tpu.dot_dimension_numbers<[2], [1], [1], [2], [0, 0, 0, 1, 1, 2], [0], [0]>} : vector<2x16x16xbf16>, vector<2x16x256xbf16>, vector<2x16x256xf32> -> vector<2x16x256xf32>
    %cst_26 = arith.constant dense<0.000000e+00> : vector<2x16x256xf32>
    %67 = tpu.matmul %44, %65, %cst_26 {dimension_numbers = #tpu.dot_dimension_numbers<[2], [1], [1], [2], [0, 0, 0, 1, 1, 2], [0], [0]>} : vector<2x16x16xbf16>, vector<2x16x256xbf16>, vector<2x16x256xf32> -> vector<2x16x256xf32>
    %68 = vector.extract_strided_slice %66 {offsets = [0, 0, 0], sizes = [2, 16, 128], strides = [1, 1, 1]} : vector<2x16x256xf32> to vector<2x16x128xf32>
    %69 = vector.extract_strided_slice %67 {offsets = [0, 0, 128], sizes = [2, 16, 128], strides = [1, 1, 1]} : vector<2x16x256xf32> to vector<2x16x128xf32>
    %70 = arith.addf %68, %69 : vector<2x16x128xf32>
    %71 = vector.shape_cast %70 : vector<2x16x128xf32> to vector<32x128xf32>
    %72 = vector.extract_strided_slice %66 {offsets = [0, 0, 128], sizes = [2, 16, 128], strides = [1, 1, 1]} : vector<2x16x256xf32> to vector<2x16x128xf32>
    %73 = vector.extract_strided_slice %67 {offsets = [0, 0, 0], sizes = [2, 16, 128], strides = [1, 1, 1]} : vector<2x16x256xf32> to vector<2x16x128xf32>
    %74 = arith.subf %72, %73 : vector<2x16x128xf32>
    %75 = vector.shape_cast %74 : vector<2x16x128xf32> to vector<32x128xf32>
    %76 = arith.truncf %71 : vector<32x128xf32> to vector<32x128xbf16>
    %cst_27 = arith.constant dense<0.000000e+00> : vector<32x256xf32>
    %77 = tpu.matmul %76, %13, %cst_27 {dimension_numbers = #tpu.dot_dimension_numbers<[1], [0], [0], [1], [0, 0, 1, 1], [], []>} : vector<32x128xbf16>, vector<128x256xbf16>, vector<32x256xf32> -> vector<32x256xf32>
    %78 = arith.truncf %75 : vector<32x128xf32> to vector<32x128xbf16>
    %cst_28 = arith.constant dense<0.000000e+00> : vector<32x256xf32>
    %79 = tpu.matmul %78, %13, %cst_28 {dimension_numbers = #tpu.dot_dimension_numbers<[1], [0], [0], [1], [0, 0, 1, 1], [], []>} : vector<32x128xbf16>, vector<128x256xbf16>, vector<32x256xf32> -> vector<32x256xf32>
    %80 = vector.extract_strided_slice %77 {offsets = [0, 0], sizes = [32, 128], strides = [1, 1]} : vector<32x256xf32> to vector<32x128xf32>
    %81 = vector.extract_strided_slice %79 {offsets = [0, 128], sizes = [32, 128], strides = [1, 1]} : vector<32x256xf32> to vector<32x128xf32>
    %82 = arith.addf %80, %81 : vector<32x128xf32>
    %83 = vector.shape_cast %82 : vector<32x128xf32> to vector<2x16x128xf32>
    %84 = vector.extract_strided_slice %79 {offsets = [0, 0], sizes = [32, 128], strides = [1, 1]} : vector<32x256xf32> to vector<32x128xf32>
    %85 = vector.extract_strided_slice %77 {offsets = [0, 128], sizes = [32, 128], strides = [1, 1]} : vector<32x256xf32> to vector<32x128xf32>
    %86 = arith.subf %84, %85 : vector<32x128xf32>
    %87 = vector.shape_cast %86 : vector<32x128xf32> to vector<2x16x128xf32>
    %c0_29 = arith.constant 0 : index
    %c0_30 = arith.constant 0 : index
    %88 = vector.load %arg15[%c0_29, %c0_30] : memref<16x128xf32, #tpu.memory_space<vmem>>, vector<16x128xf32>
    %89 = arith.mulf %8, %83 : vector<2x16x128xf32>
    %90 = arith.mulf %10, %87 : vector<2x16x128xf32>
    %91 = arith.addf %89, %90 : vector<2x16x128xf32>
    %cst_31 = arith.constant dense<0.000000e+00> : vector<16x128xf32>
    %92 = vector.multi_reduction <add>, %91, %cst_31 [0] : vector<2x16x128xf32> to vector<16x128xf32>
    %93 = arith.addf %88, %92 : vector<16x128xf32>
    %c0_32 = arith.constant 0 : index
    %c0_33 = arith.constant 0 : index
    %94 = vector.load %arg15[%c0_32, %c0_33] : memref<16x128xf32, #tpu.memory_space<vmem>>, vector<16x128xf32>
    tpu.vector_store %arg15[%c0_32, %c0_33], %93 {strides = array<i32>} : memref<16x128xf32, #tpu.memory_space<vmem>>, vector<16x128xf32>,
    %c0_34 = arith.constant 0 : index
    %c0_35 = arith.constant 0 : index
    %95 = vector.load %arg16[%c0_34, %c0_35] : memref<16x128xf32, #tpu.memory_space<vmem>>, vector<16x128xf32>
    %96 = arith.mulf %8, %87 : vector<2x16x128xf32>
    %97 = arith.mulf %10, %83 : vector<2x16x128xf32>
    %98 = arith.subf %96, %97 : vector<2x16x128xf32>
    %cst_36 = arith.constant dense<0.000000e+00> : vector<16x128xf32>
    %99 = vector.multi_reduction <add>, %98, %cst_36 [0] : vector<2x16x128xf32> to vector<16x128xf32>
    %100 = arith.addf %95, %99 : vector<16x128xf32>
    %c0_37 = arith.constant 0 : index
    %c0_38 = arith.constant 0 : index
    %101 = vector.load %arg16[%c0_37, %c0_38] : memref<16x128xf32, #tpu.memory_space<vmem>>, vector<16x128xf32>
    tpu.vector_store %arg16[%c0_37, %c0_38], %100 {strides = array<i32>} : memref<16x128xf32, #tpu.memory_space<vmem>>, vector<16x128xf32>,
    %c1_i32 = arith.constant 1 : i32
    %102 = arith.cmpi eq, %arg1, %c1_i32 : i32
    %103 = arith.extui %102 : i1 to i32
    %c0_i32_39 = arith.constant 0 : i32
    %104 = arith.cmpi ne, %103, %c0_i32_39 : i32
    scf.if %104 {
      %c0_40 = arith.constant 0 : index
      %105 = memref.load %arg2[%c0_40] : memref<1xf32, #tpu.memory_space<smem>>
      %c0_41 = arith.constant 0 : index
      %c0_42 = arith.constant 0 : index
      %106 = vector.load %arg15[%c0_41, %c0_42] : memref<16x128xf32, #tpu.memory_space<vmem>>, vector<16x128xf32>
      %c0_43 = arith.constant 0 : index
      %c0_44 = arith.constant 0 : index
      %c0_45 = arith.constant 0 : index
      %107 = vector.load %arg5[%c0_43, %c0_44, %c0_45] : memref<1x16x128xf32, #tpu.memory_space<vmem>>, vector<1x16x128xf32>
      %108 = vector.shape_cast %107 : vector<1x16x128xf32> to vector<16x128xf32>
      %109 = arith.subf %106, %108 : vector<16x128xf32>
      %110 = vector.broadcast %105 : f32 to vector<16x128xf32>
      %111 = arith.mulf %110, %109 : vector<16x128xf32>
      %112 = arith.subf %4, %111 : vector<16x128xf32>
      %c0_46 = arith.constant 0 : index
      %c0_47 = arith.constant 0 : index
      %c0_48 = arith.constant 0 : index
      %113 = vector.load %arg13[%c0_46, %c0_47, %c0_48] : memref<1x16x128xf32, #tpu.memory_space<vmem>>, vector<1x16x128xf32>
      %114 = vector.shape_cast %113 : vector<1x16x128xf32> to vector<16x128xf32>
      %115 = vector.shape_cast %112 : vector<16x128xf32> to vector<1x16x128xf32>
      tpu.vector_store %arg13[%c0_46, %c0_47, %c0_48], %115 {strides = array<i32>} : memref<1x16x128xf32, #tpu.memory_space<vmem>>, vector<1x16x128xf32>,
      %c0_49 = arith.constant 0 : index
      %c0_50 = arith.constant 0 : index
      %116 = vector.load %arg16[%c0_49, %c0_50] : memref<16x128xf32, #tpu.memory_space<vmem>>, vector<16x128xf32>
      %c0_51 = arith.constant 0 : index
      %c0_52 = arith.constant 0 : index
      %c0_53 = arith.constant 0 : index
      %117 = vector.load %arg6[%c0_51, %c0_52, %c0_53] : memref<1x16x128xf32, #tpu.memory_space<vmem>>, vector<1x16x128xf32>
      %118 = vector.shape_cast %117 : vector<1x16x128xf32> to vector<16x128xf32>
      %119 = arith.subf %116, %118 : vector<16x128xf32>
      %120 = vector.broadcast %105 : f32 to vector<16x128xf32>
      %121 = arith.mulf %120, %119 : vector<16x128xf32>
      %122 = arith.subf %6, %121 : vector<16x128xf32>
      %c0_54 = arith.constant 0 : index
      %c0_55 = arith.constant 0 : index
      %c0_56 = arith.constant 0 : index
      %123 = vector.load %arg14[%c0_54, %c0_55, %c0_56] : memref<1x16x128xf32, #tpu.memory_space<vmem>>, vector<1x16x128xf32>
      %124 = vector.shape_cast %123 : vector<1x16x128xf32> to vector<16x128xf32>
      %125 = vector.shape_cast %122 : vector<16x128xf32> to vector<1x16x128xf32>
      tpu.vector_store %arg14[%c0_54, %c0_55, %c0_56], %125 {strides = array<i32>} : memref<1x16x128xf32, #tpu.memory_space<vmem>>, vector<1x16x128xf32>,
    } else {
    }
    return
  }
  func.func @transform_0(%arg0: i32, %arg1: i32) -> i32 {
    %c0_i32 = arith.constant 0 : i32
    %c0_i32_0 = arith.constant 0 : i32
    return %c0_i32 : i32
  }
  func.func @transform_1(%arg0: i32, %arg1: i32) -> (i32, i32, i32) {
    %c0_i32 = arith.constant 0 : i32
    %c0_i32_0 = arith.constant 0 : i32
    %c0_i32_1 = arith.constant 0 : i32
    return %arg0, %c0_i32, %c0_i32_0 : i32, i32, i32
  }
  func.func @transform_2(%arg0: i32, %arg1: i32) -> (i32, i32, i32) {
    %c0_i32 = arith.constant 0 : i32
    %c0_i32_0 = arith.constant 0 : i32
    %c0_i32_1 = arith.constant 0 : i32
    return %arg0, %c0_i32, %c0_i32_0 : i32, i32, i32
  }
  func.func @transform_3(%arg0: i32, %arg1: i32) -> (i32, i32, i32) {
    %c0_i32 = arith.constant 0 : i32
    %c0_i32_0 = arith.constant 0 : i32
    %c0_i32_1 = arith.constant 0 : i32
    return %arg0, %c0_i32, %c0_i32_0 : i32, i32, i32
  }
  func.func @transform_4(%arg0: i32, %arg1: i32) -> (i32, i32, i32) {
    %c0_i32 = arith.constant 0 : i32
    %c0_i32_0 = arith.constant 0 : i32
    %c0_i32_1 = arith.constant 0 : i32
    return %arg0, %c0_i32, %c0_i32_0 : i32, i32, i32
  }
  func.func @transform_5(%arg0: i32, %arg1: i32) -> (i32, i32, i32, i32) {
    %c0_i32 = arith.constant 0 : i32
    %c0_i32_0 = arith.constant 0 : i32
    %c0_i32_1 = arith.constant 0 : i32
    return %arg0, %arg1, %c0_i32, %c0_i32_0 : i32, i32, i32, i32
  }
  func.func @transform_6(%arg0: i32, %arg1: i32) -> (i32, i32, i32, i32) {
    %c0_i32 = arith.constant 0 : i32
    %c0_i32_0 = arith.constant 0 : i32
    %c0_i32_1 = arith.constant 0 : i32
    return %arg0, %arg1, %c0_i32, %c0_i32_0 : i32, i32, i32, i32
  }
  func.func @transform_7(%arg0: i32, %arg1: i32) -> (i32, i32) {
    %c0_i32 = arith.constant 0 : i32
    %c0_i32_0 = arith.constant 0 : i32
    %c0_i32_1 = arith.constant 0 : i32
    return %c0_i32, %c0_i32_0 : i32, i32
  }
  func.func @transform_8(%arg0: i32, %arg1: i32) -> (i32, i32) {
    %c0_i32 = arith.constant 0 : i32
    %c0_i32_0 = arith.constant 0 : i32
    %c0_i32_1 = arith.constant 0 : i32
    return %c0_i32, %c0_i32_0 : i32, i32
  }
  func.func @transform_9(%arg0: i32, %arg1: i32) -> (i32, i32) {
    %c0_i32 = arith.constant 0 : i32
    %c0_i32_0 = arith.constant 0 : i32
    %c0_i32_1 = arith.constant 0 : i32
    return %c0_i32, %c0_i32_0 : i32, i32
  }
  func.func @transform_10(%arg0: i32, %arg1: i32) -> (i32, i32) {
    %c0_i32 = arith.constant 0 : i32
    %c0_i32_0 = arith.constant 0 : i32
    %c0_i32_1 = arith.constant 0 : i32
    return %c0_i32, %c0_i32_0 : i32, i32
  }
  func.func @transform_11(%arg0: i32, %arg1: i32) -> (i32, i32, i32) {
    %c0_i32 = arith.constant 0 : i32
    %c0_i32_0 = arith.constant 0 : i32
    %c0_i32_1 = arith.constant 0 : i32
    return %arg0, %c0_i32, %c0_i32_0 : i32, i32, i32
  }
  func.func @transform_12(%arg0: i32, %arg1: i32) -> (i32, i32, i32) {
    %c0_i32 = arith.constant 0 : i32
    %c0_i32_0 = arith.constant 0 : i32
    %c0_i32_1 = arith.constant 0 : i32
    return %arg0, %c0_i32, %c0_i32_0 : i32, i32, i32
  }
}

</mosaic_0001>

<bundles_post_ra>
// kernel: tpu_custom_call.1
= control target key start
LH: loop header
LB: loop body
LE: loop exit
PB: predicated region body
PF: predicated region fallthrough
CT: control target
= control target key end

     0   :  { %s3340_s0 = inlined_call_operand.<no memory space> [shape: f32[1], index: 0, kind: input, shape index: {}]   ;;  %s3341_s1 = inlined_call_operand.hbm [shape: f32[2,16,128], index: 1, kind: input, shape index: {}]   ;;  %s3342_s2 = inlined_call_operand.hbm [shape: f32[2,16,128], index: 2, kind: input, shape index: {}]   ;;  %s3343_s3 = inlined_call_operand.hbm [shape: f32[2,16,128], index: 3, kind: input, shape index: {}]   ;;  %s3344_s4 = inlined_call_operand.hbm [shape: f32[2,16,128], index: 4, kind: input, shape index: {}]   ;;  %s3345_s5 = inlined_call_operand.hbm [shape: f32[2,4,16,128], index: 5, kind: input, shape index: {}]   ;;  %s3346_s6 = inlined_call_operand.hbm [shape: f32[2,4,16,128], index: 6, kind: input, shape index: {}]   ;;  %s3347_s7 = inlined_call_operand.vmem [shape: f32[16,128], index: 7, kind: input, shape index: {}]   ;;  %s3348_s8 = inlined_call_operand.vmem [shape: bf16[16,16], index: 8, kind: input, shape index: {}]   ;;  %s3349_s9 = inlined_call_operand.vmem [shape: bf16[16,16], index: 9, kind: input, shape index: {}]   ;;  %s3350_s10 = inlined_call_operand.hbm [shape: bf16[128,256], index: 10, kind: input, shape index: {}]   ;;  %s3351_s11 = inlined_call_operand.hbm [shape: f32[2,16,128], index: 11, kind: output, shape index: {0}]   ;;  %s3352_s12 = inlined_call_operand.hbm [shape: f32[2,16,128], index: 12, kind: output, shape index: {1}]  }
   0x1   :  { %3380 = sst [smem:[#allocation36_spill]] %s3341_s1 }
   0x2   :  { %3381 = sst [smem:[#allocation37_spill]] %s3342_s2 }
   0x3   :  { %3382 = sst [smem:[#allocation38_spill]] %s3343_s3 }
   0x4   :  { %3383 = sst [smem:[#allocation39_spill]] %s3344_s4 }
   0x5   :  { %3384 = sst [smem:[#allocation40_spill]] %s3345_s5 }
   0x6   :  { %3385 = sst [smem:[#allocation41_spill]] %s3347_s7 }
   0x7   :  { %3386 = sst [smem:[#allocation42_spill]] %s3348_s8 }
   0x8   :  { %3387 = sst [smem:[#allocation43_spill]] %s3349_s9 }
   0x9   :  { %3388 = sst [smem:[#allocation44_spill]] %s3350_s10 }
   0xa   :  { %3389 = sst [smem:[#allocation45_spill]] %s3351_s11 }
   0xb   :  { %3390 = sst [smem:[#allocation46_spill]] %s3352_s12 }
   0xc   :  { %18 = sst [smem:[#allocation4]] %s3340_s0 }
   0xd   :  { %19 = vsyncpa [#allocation6], 0 }
   0xe   :  { %21 = vsyncpa [#allocation6 + $0x1], 0 }
   0xf   :  { %22 = vsyncpa [#allocation9], 0 }
  0x10   :  { %24 = vsyncpa [#allocation9 + $0x1], 0 }
  0x11   :  { %25 = vsyncpa [#allocation12], 0 }
  0x12   :  { %27 = vsyncpa [#allocation12 + $0x1], 0 }
  0x13   :  { %28 = vsyncpa [#allocation15], 0 }
  0x14   :  { %30 = vsyncpa [#allocation15 + $0x1], 0 }
  0x15   :  { %31 = vsyncpa [#allocation7], 0 }
  0x16   :  { %33 = vsyncpa [#allocation7 + $0x1], 0 }
  0x17   :  { %34 = vsyncpa [#allocation19], 0 }
  0x18   :  { %36 = vsyncpa [#allocation19 + $0x1], 0  ;;  %s2520_s23 = smov 0   ;;  %s2522_s24 = smov 0  }
  0x19   :  { %s2524_s25 = smov 0   ;;  %s2526_s26 = smov 0  }
  0x1a   :  { %s2528_s0 = smov 0   ;;  %s2530_s27 = smov 0  }
  0x1b   :  { %s2532_s28 = smov 0   ;;  %s2534_s29 = smov 0  }
  0x1c   :  { %s2536_s30 = smov 0   ;;  %s2538_s13 = smov 0  }
  0x1d   :  { %s2540_s14 = smov 0  }
  0x1e LB: > { %3391 = sst [smem:[#allocation28_spill]] %s2407_s26  ;;  %s2574_s15 = sadd.s32 4294967295, %s2435_s14   ;;  %s2435_s14 = sphi %s2540_s14, %s42_s14   ;;  %s2431_s13 = sphi %s2538_s13, %s3457_s13   ;;  %s2427_s30 = sphi %s2536_s30, %s3456_s30   ;;  %s2423_s29 = sphi %s2534_s29, %s3455_s29   ;;  %s2419_s28 = sphi %s2532_s28, %s3454_s28   ;;  %s2415_s27 = sphi %s2530_s27, %s3453_s27   ;;  %s2411_s0 = sphi %s2528_s0, %s3452_s0   ;;  %s2407_s26 = sphi %s2526_s26, %s3451_s26   ;;  %s2403_s25 = sphi %s2524_s25, %s3450_s25   ;;  %s2399_s24 = sphi %s2522_s24, %s3449_s24   ;;  %s2395_s23 = sphi %s2520_s23, %s3448_s23  }
  0x1f   : > { %3392 = sst [smem:[#allocation29_spill]] %s2419_s28  ;;  %s1798_s16 = sadd.s32 4294967294, %s2435_s14  }
  0x20   : > { %3393 = sst [smem:[#allocation30_spill]] %s2423_s29  ;;  %p95_p0 = scmp.ne.s32.totalorder %s2411_s0, %s2407_s26 }
  0x21   : > { %3394 = sst [smem:[#allocation31_spill]] %s2574_s15  ;;  %p3359_p1 = scmp.eq.s32.totalorder %s2574_s15, 0 }
  0x22   : > { %p201_p2 = scmp.ne.s32.totalorder %s2399_s24, %s2395_s23  ;;  %p343_p5 = scmp.eq.s32.totalorder %s1798_s16, 3 }
  0x23   : > { %p2584_p4 = por %p3359_p1, %p95_p0  ;;  %p1799_p7 = scmp.ge.s32.totalorder %s2435_s14, 1 }
  0x24   : > { %p2590_p6 = por %p201_p2, %p3359_p1  ;;  %p2595_p8 = por %p343_p5, %p95_p0 }
  0x25   : > { %s3395_s17 = scalar_select %p2584_p4, 1, 0 }
  0x26   : > { %s3396_s18 = scalar_select %p2590_p6, 1, 0 }
  0x27   : > { %s3398_s19 = scalar_select %p2595_p8, 1, 0 }
  0x28   : > { %3397 = sst [smem:[#allocation32_spill]] %s3396_s18  ;;  %p376_p9 = scmp.lt.s32.totalorder %s2435_s14, 5 }
  0x29   : > { %3399 = sst [smem:[#allocation33_spill]] %s3398_s19  ;;  %s2437_s21 = smov [#allocation16]  }
  0x2a   : > { %p2600_p10 = pnand %p1799_p7, %p376_p9  ;;  %s400_s22 = sshll.u32 %s2437_s21, 4  ;;  %s401_s22 = int_to_ptr.vmem [resolvable:$true] %s400_s22 }
  0x2b   : > { %s3402_s10 = sld [smem:[#allocation44_spill]] }
  0x2c   : > { %s3400_s20 = scalar_select %p2600_p10, 1, 0 }
  0x2d   : > { %p1898_p11 = pneg %p2600_p10 }
  0x2f   : > { %p2608_p12 = pnand %p1898_p11, %p3359_p1 }
  0x31   : > { %s2053_s12 = scalar_lea.hbm %s3402_s10, 2048  ;;  %p2055_p0 = pneg %p2608_p12 }
  0x32   : > { %p2054_p13 = scmp.ne.s32.totalorder %s3402_s10, %s2053_s12  ;;  %p2060_p7 = scmp.lt.u32.totalorder %s2053_s12, %s3402_s10 }
  0x34   : > { %p2056_p2 = pnand %p2055_p0, %p2054_p13 }
  0x36   : > { %p2057_p5 = pneg %p2056_p2 }
  0x38   : > { %p2062_p9 = pnand %p2060_p7, %p2057_p5 }
  0x3a   : > { %2065 = shalt.err (!%p2062_p9)
}
  0x3b   : > { %s2066_s9 = scalar_lea.vmem %s401_s22, 2048  ;;  %p2074_p8 = scmp.lt.s32.totalorder %s401_s22, %s401_s22 }
  0x3c   : > { %p2067_p11 = scmp.ne.s32.totalorder %s401_s22, %s2066_s9  ;;  %p2075_p6 = scmp.lt.s32.totalorder %s2066_s9, %s2066_s9 }
  0x3e   : > { %p2069_p1 = pnand %p2067_p11, %p2055_p0  ;;  %p2076_p4 = por %p2075_p6, %p2074_p8 }
  0x40   : > { %p2070_p3 = pneg %p2069_p1 }
  0x42   : > { %p2077_p10 = pnand %p2076_p4, %p2070_p3 }
  0x44   : > { %2080 = shalt.err (!%p2077_p10)
}
  0x45   : > { %s3364_s11 = smov 128   ;;  %s3366_s7 = smov 8  }
  0x46   : > { %1901 = dma.hbm_to_vmem [thread:$0]  (!%p2608_p12), %s3402_s10, 2048, %s401_s22, [#allocation15], %s3364_s11, %s3364_s11, %s3366_s7  }
  0x47   : > { %p89_p1 = scmp.ne.s32.totalorder %s2415_s27, %s2411_s0  ;;  %p3371_p3 = scmp.eq.s32.totalorder %s2435_s14, 0 }
  0x48   : > { %p3370_p4 = scmp.lt.s32.totalorder %s2435_s14, 4  ;;  %p3403_p6 = scmp.eq.s32.totalorder %s2574_s15, 3 }
  0x49   : > { %s3363_s19 = sand.u32 1, %s2415_s27   ;;  %p91_p10 = por %p3371_p3, %p89_p1 }
  0x4a   : > { %p2639_p8 = por %p3403_p6, %p89_p1  ;;  %s2648_s23 = sshll.u32 %s3363_s19, 4 }
  0x4b   : > { %s2651_s21 = sshll.u32 %s2431_s13, 8  ;;  %s2654_s22 = sand.u32 1, %s2435_s14  }
  0x4c   : > { %s3404_s29 = scalar_select %p2639_p8, 1, 0 }
  0x4d   : > { %p2658_p12 = pnand %p3370_p4, %p91_p10  ;;  %s3407_s2 = sld [smem:[#allocation37_spill]] }
  0x4e   : > { %3405 = sst [smem:[#allocation34_spill]] %s3404_s29  ;;  %s439_s19 = scalar_lea.vmem [#allocation8], %s2648_s23 }
  0x4f   : > { %s446_s11 = sshll.u32 %s439_s19, 4  ;;  %p2676_p0 = pneg %p2658_p12  ;;  %s2669_s11 = int_to_ptr.vmem [resolvable:$true] %s446_s11 }
  0x53   : > { %s2666_s16 = scalar_lea.hbm %s3407_s2, %s2651_s21  ;;  %s2086_s8 = scalar_lea.hbm %s3407_s2, 512 }
  0x54   : > { %s2081_s10 = scalar_lea.hbm %s2666_s16, 256  ;;  %p2087_p7 = scmp.lt.u32.totalorder %s2666_s16, %s3407_s2 }
  0x55   : > { %p2082_p13 = scmp.ne.s32.totalorder %s2666_s16, %s2081_s10  ;;  %p2088_p9 = scmp.lt.u32.totalorder %s2086_s8, %s2081_s10 }
  0x56   : > { %p2090_p1 = scmp.lt.u32.totalorder %s2081_s10, %s2666_s16 }
  0x57   : > { %p2084_p2 = pnand %p2676_p0, %p2082_p13  ;;  %p2089_p11 = por %p2088_p9, %p2087_p7 }
  0x59   : > { %p2085_p5 = pneg %p2084_p2  ;;  %p2091_p6 = por %p2090_p1, %p2089_p11 }
  0x5b   : > { %p2092_p10 = pnand %p2091_p6, %p2085_p5 }
  0x5d   : > { %2095 = shalt.err (!%p2092_p10)
}
  0x5e   : > { %s2096_s7 = scalar_lea.vmem %s2669_s11, 256  ;;  %s2440_s26 = smov [#allocation8]  }
  0x5f   : > { %p2097_p13 = scmp.ne.s32.totalorder %s2669_s11, %s2096_s7  ;;  %s2101_s12 = sshll.u32 %s2440_s26, 4  ;;  %s2102_s12 = int_to_ptr.vmem [resolvable:$false] %s2101_s12 }
  0x60   : > { %s2103_s28 = scalar_lea.vmem %s2102_s12, 512  ;;  %p2104_p3 = scmp.lt.s32.totalorder %s2669_s11, %s2102_s12 }
  0x61   : > { %p2099_p2 = pnand %p2097_p13, %p2676_p0  ;;  %p2105_p8 = scmp.lt.s32.totalorder %s2103_s28, %s2096_s7 }
  0x63   : > { %p2100_p4 = pneg %p2099_p2  ;;  %p2106_p7 = por %p2105_p8, %p2104_p3 }
  0x65   : > { %p2107_p9 = pnand %p2106_p7, %p2100_p4 }
  0x67   : > { %2110 = shalt.err (!%p2107_p9)
}
  0x68   : > { %s3409_s8 = smov 8   ;;  %s3410_s10 = smov 128  }
  0x69   : > { %s3411_s19 = scalar_lea.sflag [#allocation9], %s2654_s22  ;;  %s3412_s4 = sld [smem:[#allocation39_spill]] }
  0x6a   : > { %1908 = dma.hbm_to_vmem [thread:$0]  (!%p2658_p12), %s2666_s16, 256, %s2669_s11, %s3411_s19, %s3410_s10, %s3410_s10, %s3409_s8  }
  0x6b   : > { %s481_s28 = scalar_lea.vmem [#allocation11], %s2648_s23  ;;  %s3377_s18 = scalar_lea.sflag [#allocation12], %s2654_s22 }
  0x6c   : > { %s488_s2 = sshll.u32 %s481_s28, 4  ;;  %s2711_s2 = int_to_ptr.vmem [resolvable:$true] %s488_s2 }
  0x6f   : > { %s2708_s7 = scalar_lea.hbm %s3412_s4, %s2651_s21  ;;  %s2116_s19 = scalar_lea.hbm %s3412_s4, 512 }
  0x70   : > { %s2111_s15 = scalar_lea.hbm %s2708_s7, 256  ;;  %p2117_p5 = scmp.lt.u32.totalorder %s2708_s7, %s3412_s4 }
  0x71   : > { %p2112_p3 = scmp.ne.s32.totalorder %s2708_s7, %s2111_s15  ;;  %p2118_p11 = scmp.lt.u32.totalorder %s2116_s19, %s2111_s15 }
  0x72   : > { %p2120_p6 = scmp.lt.u32.totalorder %s2111_s15, %s2708_s7 }
  0x73   : > { %p2114_p4 = pnand %p2112_p3, %p2676_p0  ;;  %p2119_p1 = por %p2118_p11, %p2117_p5 }
  0x75   : > { %p2115_p8 = pneg %p2114_p4  ;;  %p2121_p10 = por %p2120_p6, %p2119_p1 }
  0x77   : > { %p2122_p13 = pnand %p2121_p10, %p2115_p8 }
  0x79   : > { %2125 = shalt.err (!%p2122_p13)
}
  0x7a   : > { %s2126_s28 = scalar_lea.vmem %s2711_s2, 256  ;;  %s2441_s16 = smov [#allocation11]  }
  0x7b   : > { %p2127_p2 = scmp.ne.s32.totalorder %s2711_s2, %s2126_s28  ;;  %s2131_s11 = sshll.u32 %s2441_s16, 4  ;;  %s2132_s11 = int_to_ptr.vmem [resolvable:$false] %s2131_s11 }
  0x7c   : > { %s2133_s26 = scalar_lea.vmem %s2132_s11, 512  ;;  %p2134_p3 = scmp.lt.s32.totalorder %s2711_s2, %s2132_s11 }
  0x7d   : > { %p2129_p7 = pnand %p2127_p2, %p2676_p0  ;;  %p2135_p4 = scmp.lt.s32.totalorder %s2133_s26, %s2126_s28 }
  0x7f   : > { %p2130_p9 = pneg %p2129_p7  ;;  %p2136_p5 = por %p2135_p4, %p2134_p3 }
  0x81   : > { %p2137_p11 = pnand %p2136_p5, %p2130_p9 }
  0x83   : > { %2140 = shalt.err (!%p2137_p11)
}
  0x84   : > { %1914 = dma.hbm_to_vmem [thread:$0]  (!%p2658_p12), %s2708_s7, 256, %s2711_s2, %s3377_s18, %s3410_s10, %s3410_s10, %s3409_s8  }
  0x85   : > { %s3413_s1 = sld [smem:[#allocation36_spill]]  ;;  %s418_s28 = scalar_lea.vmem [#allocation5], %s2648_s23 }
  0x86   : > { %s425_s16 = sshll.u32 %s418_s28, 4  ;;  %s3414_s11 = sand.u32 1, %s2415_s27   ;;  %s2747_s16 = int_to_ptr.vmem [resolvable:$true] %s425_s16 }
  0x87   : > { %s2751_s26 = scalar_lea.sflag [#allocation6], %s3414_s11 }
  0x8b   : > { %s2744_s12 = scalar_lea.hbm %s3413_s1, %s2651_s21  ;;  %s2146_s15 = scalar_lea.hbm %s3413_s1, 512 }
  0x8c   : > { %s2141_s4 = scalar_lea.hbm %s2744_s12, 256  ;;  %p2147_p10 = scmp.lt.u32.totalorder %s2744_s12, %s3413_s1 }
  0x8d   : > { %p2142_p8 = scmp.ne.s32.totalorder %s2744_s12, %s2141_s4  ;;  %p2148_p13 = scmp.lt.u32.totalorder %s2146_s15, %s2141_s4 }
  0x8e   : > { %p2150_p7 = scmp.lt.u32.totalorder %s2141_s4, %s2744_s12 }
  0x8f   : > { %p2144_p1 = pnand %p2142_p8, %p2676_p0  ;;  %p2149_p2 = por %p2148_p13, %p2147_p10 }
  0x91   : > { %p2145_p6 = pneg %p2144_p1  ;;  %p2151_p9 = por %p2150_p7, %p2149_p2 }
  0x93   : > { %p2152_p3 = pnand %p2151_p9, %p2145_p6 }
  0x95   : > { %2155 = shalt.err (!%p2152_p3)
}
  0x96   : > { %s2156_s28 = scalar_lea.vmem %s2747_s16, 256  ;;  %s2442_s11 = smov [#allocation5]  }
  0x97   : > { %p2157_p4 = scmp.ne.s32.totalorder %s2747_s16, %s2156_s28  ;;  %s2161_s2 = sshll.u32 %s2442_s11, 4  ;;  %s2162_s2 = int_to_ptr.vmem [resolvable:$false] %s2161_s2 }
  0x98   : > { %s2163_s18 = scalar_lea.vmem %s2162_s2, 512  ;;  %p2164_p8 = scmp.lt.s32.totalorder %s2747_s16, %s2162_s2 }
  0x99   : > { %p2159_p5 = pnand %p2157_p4, %p2676_p0  ;;  %p2165_p1 = scmp.lt.s32.totalorder %s2163_s18, %s2156_s28 }
  0x9b   : > { %p2160_p11 = pneg %p2159_p5  ;;  %p2166_p10 = por %p2165_p1, %p2164_p8 }
  0x9d   : > { %p2167_p13 = pnand %p2166_p10, %p2160_p11 }
  0x9f   : > { %2170 = shalt.err (!%p2167_p13)
}
  0xa0   : > { %1905 = dma.hbm_to_vmem [thread:$0]  (!%p2658_p12), %s2744_s12, 256, %s2747_s16, %s2751_s26, %s3410_s10, %s3410_s10, %s3409_s8  }
  0xa1   : > { %s3415_s3 = sld [smem:[#allocation38_spill]]  ;;  %s460_s19 = scalar_lea.vmem [#allocation10], %s2648_s23 }
  0xa2   : > { %s467_s28 = sshll.u32 %s460_s19, 4  ;;  %s2785_s28 = int_to_ptr.vmem [resolvable:$true] %s467_s28 }
  0xa7   : > { %s2782_s15 = scalar_lea.hbm %s3415_s3, %s2651_s21  ;;  %s2176_s16 = scalar_lea.hbm %s3415_s3, 512 }
  0xa8   : > { %s2171_s11 = scalar_lea.hbm %s2782_s15, 256  ;;  %p2177_p9 = scmp.lt.u32.totalorder %s2782_s15, %s3415_s3 }
  0xa9   : > { %p2172_p6 = scmp.ne.s32.totalorder %s2782_s15, %s2171_s11  ;;  %p2178_p3 = scmp.lt.u32.totalorder %s2176_s16, %s2171_s11 }
  0xaa   : > { %p2180_p5 = scmp.lt.u32.totalorder %s2171_s11, %s2782_s15 }
  0xab   : > { %p2174_p2 = pnand %p2172_p6, %p2676_p0  ;;  %p2179_p4 = por %p2178_p3, %p2177_p9 }
  0xad   : > { %p2175_p7 = pneg %p2174_p2  ;;  %p2181_p11 = por %p2180_p5, %p2179_p4 }
  0xaf   : > { %p2182_p8 = pnand %p2181_p11, %p2175_p7 }
  0xb1   : > { %2185 = shalt.err (!%p2182_p8)
}
  0xb2   : > { %s2186_s23 = scalar_lea.vmem %s2785_s28, 256  ;;  %s2443_s18 = smov [#allocation10]  }
  0xb3   : > { %p2187_p1 = scmp.ne.s32.totalorder %s2785_s28, %s2186_s23  ;;  %s2191_s4 = sshll.u32 %s2443_s18, 4  ;;  %s2192_s4 = int_to_ptr.vmem [resolvable:$false] %s2191_s4 }
  0xb4   : > { %s2193_s7 = scalar_lea.vmem %s2192_s4, 512  ;;  %p2194_p6 = scmp.lt.s32.totalorder %s2785_s28, %s2192_s4 }
  0xb5   : > { %p2189_p10 = pnand %p2187_p1, %p2676_p0  ;;  %p2195_p2 = scmp.lt.s32.totalorder %s2193_s7, %s2186_s23 }
  0xb7   : > { %p2190_p13 = pneg %p2189_p10  ;;  %p2196_p9 = por %p2195_p2, %p2194_p6 }
  0xb9   : > { %p2197_p3 = pnand %p2196_p9, %p2190_p13 }
  0xbb   : > { %2200 = shalt.err (!%p2197_p3)
}
  0xbc   : > { %s3416_s19 = scalar_lea.sflag [#allocation9], %s2654_s22  ;;  %s188_s29 = sadd.s32 1, %s2403_s25 }
  0xbd   : > { %1911 = dma.hbm_to_vmem [thread:$0]  (!%p2658_p12), %s2782_s15, 256, %s2785_s28, %s3416_s19, %s3410_s10, %s3410_s10, %s3409_s8  }
  0xbe   : > { %s51_s9 = sadd.s32 1, %s2427_s30  ;;  %p195_p0 = scmp.ne.s32.totalorder %s2403_s25, %s2399_s24 }
  0xbf   : > { %p52_p7 = scmp.ge.s32.totalorder %s51_s9, 2  ;;  %s500_s11 = sand.u32 1, %s2403_s25  }
  0xc0   : > { %p3417_p4 = scmp.eq.s32.totalorder %s2435_s14, 0  ;;  %s1814_s12 = sshll.u32 %s500_s11, 5 }
  0xc1   : > { %s3459_s9 = smov (%p52_p7, %s51_s9), 0  ;;  %s3420_s16 = sadd.s32 1, %s2431_s13 }
  0xc2   : > { %p2820_p5 = por %p195_p0, %p3417_p4  ;;  %3419 = sst [smem:[#allocation35_spill]] %s3459_s9 }
  0xc3   : > { %s3461_s16 = smov (!%p52_p7, %s3420_s16), %s2431_s13  ;;  %s184_s15 = ssub.s32 %s2427_s30, %s3459_s9 }
  0xc4   : > { %p56_p12 = scmp.ge.s32.totalorder %s3461_s16, 2  ;;  %s1874_s28 = sshll.u32 %s2427_s30, 2 }
  0xc5   : > { %s1817_s26 = sshll.u32 %s2431_s13, 3  ;;  %s502_s21 = scalar_lea.vmem [#allocation13], %s1814_s12 }
  0xc6   : > { %s512_s23 = sshll.u32 %s502_s21, 4  ;;  %s3463_s16 = smov (%p56_p12, %s3461_s16), 0  ;;  %s2835_s23 = int_to_ptr.vmem [resolvable:$true] %s512_s23 }
  0xc7   : > { %s509_s18 = sadd.s32 %s1874_s28, %s1817_s26  ;;  %s79_s4 = ssub.s32 %s2431_s13, %s3463_s16 }
  0xc8   : > { %s1818_s7 = sshll.u32 %s509_s18, 7  ;;  %p80_p11 = scmp.eq.s32.totalorder %s79_s4, 0 }
  0xc9   : > { %s185_s19 = sor.u32 %s184_s15, %s79_s4  ;;  %s3421_s5 = sld [smem:[#allocation40_spill]] }
  0xca   : > { %p186_p8 = scmp.eq.s32.totalorder %s185_s19, 0  ;;  %s3422_s9 = sadd.s32 1, %s2415_s27 }
  0xcb   : > { %s2847_s21 = scalar_select %p80_p11, %s2415_s27, %s3422_s9  }
  0xcc   : > { %s2850_s28 = scalar_select %p186_p8, %s2403_s25, %s188_s29  }
  0xcd   : > { %p3423_p1 = scmp.lt.s32.totalorder %s2435_s14, 4  ;;  %s2863_s1 = scalar_lea.hbm %s3346_s6, %s1818_s7 }
  0xce   : > { %s526_s4 = scalar_lea.vmem [#allocation14], %s1814_s12 }
  0xcf   : > { %s2842_s3 = scalar_lea.hbm %s3421_s5, %s1818_s7  ;;  %p2856_p10 = pnand %p3423_p1, %p2820_p5 }
  0xd0   : > { %s2865_s19 = sshll.u32 %s526_s4, 4  ;;  %s2201_s9 = scalar_lea.hbm %s2842_s3, 512  ;;  %s2898_s19 = int_to_ptr.vmem [resolvable:$true] %s2865_s19 }
  0xd1   : > { %p2202_p13 = scmp.ne.s32.totalorder %s2842_s3, %s2201_s9  ;;  %p2203_p6 = pneg %p2856_p10 }
  0xd2   : > { %s2206_s11 = scalar_lea.hbm %s3421_s5, 2048  ;;  %p2207_p3 = scmp.lt.u32.totalorder %s2842_s3, %s3421_s5 }
  0xd3   : > { %p2204_p2 = pnand %p2203_p6, %p2202_p13  ;;  %p2208_p0 = scmp.lt.u32.totalorder %s2206_s11, %s2201_s9 }
  0xd4   : > { %p2210_p4 = scmp.lt.u32.totalorder %s2201_s9, %s2842_s3 }
  0xd5   : > { %p2205_p9 = pneg %p2204_p2  ;;  %p2209_p7 = por %p2208_p0, %p2207_p3 }
  0xd7   : > { %p2211_p5 = por %p2210_p4, %p2209_p7 }
  0xd9   : > { %p2212_p12 = pnand %p2211_p5, %p2205_p9 }
  0xdb   : > { %2215 = shalt.err (!%p2212_p12)
}
  0xdc   : > { %s2216_s12 = scalar_lea.vmem %s2835_s23, 512  ;;  %s2444_s7 = smov [#allocation13]  }
  0xdd   : > { %p2217_p11 = scmp.ne.s32.totalorder %s2835_s23, %s2216_s12  ;;  %s2221_s4 = sshll.u32 %s2444_s7, 4  ;;  %s2222_s4 = int_to_ptr.vmem [resolvable:$false] %s2221_s4 }
  0xde   : > { %s2223_s29 = scalar_lea.vmem %s2222_s4, 1024  ;;  %p2224_p13 = scmp.lt.s32.totalorder %s2835_s23, %s2222_s4 }
  0xdf   : > { %p2219_p8 = pnand %p2217_p11, %p2203_p6  ;;  %p2225_p2 = scmp.lt.s32.totalorder %s2223_s29, %s2216_s12 }
  0xe1   : > { %p2220_p1 = pneg %p2219_p8  ;;  %p2226_p3 = por %p2225_p2, %p2224_p13 }
  0xe3   : > { %p2227_p0 = pnand %p2226_p3, %p2220_p1 }
  0xe5   : > { %2230 = shalt.err (!%p2227_p0)
}
  0xe6   : > { %s3425_s9 = scalar_lea.sflag [#allocation12], %s2654_s22  ;;  %s523_s2 = scalar_lea.sflag [#allocation15], %s2654_s22 }
  0xe7   : > { %1917 = dma.hbm_to_vmem [thread:$0]  (!%p2856_p10), %s2842_s3, 512, %s2835_s23, %s3425_s9, %s3410_s10, %s3410_s10, %s3409_s8  }
  0xe8   : > { %s2231_s11 = scalar_lea.hbm %s2863_s1, 512  ;;  %s2236_s12 = scalar_lea.hbm %s3346_s6, 2048 }
  0xe9   : > { %p2232_p9 = scmp.ne.s32.totalorder %s2863_s1, %s2231_s11  ;;  %p2237_p5 = scmp.lt.u32.totalorder %s2863_s1, %s3346_s6 }
  0xea   : > { %p2238_p12 = scmp.lt.u32.totalorder %s2236_s12, %s2231_s11  ;;  %p2240_p8 = scmp.lt.u32.totalorder %s2231_s11, %s2863_s1 }
  0xeb   : > { %p2234_p7 = pnand %p2232_p9, %p2203_p6 }
  0xec   : > { %p2239_p11 = por %p2238_p12, %p2237_p5 }
  0xed   : > { %p2235_p4 = pneg %p2234_p7 }
  0xee   : > { %p2241_p1 = por %p2240_p8, %p2239_p11 }
  0xf0   : > { %p2242_p13 = pnand %p2241_p1, %p2235_p4 }
  0xf2   : > { %2245 = shalt.err (!%p2242_p13)
}
  0xf3   : > { %s2246_s3 = scalar_lea.vmem %s2898_s19, 512  ;;  %s2445_s23 = smov [#allocation14]  }
  0xf4   : > { %p2247_p2 = scmp.ne.s32.totalorder %s2898_s19, %s2246_s3  ;;  %s2251_s29 = sshll.u32 %s2445_s23, 4  ;;  %s2252_s29 = int_to_ptr.vmem [resolvable:$false] %s2251_s29 }
  0xf5   : > { %s2253_s9 = scalar_lea.vmem %s2252_s29, 1024  ;;  %p2254_p9 = scmp.lt.s32.totalorder %s2898_s19, %s2252_s29 }
  0xf6   : > { %p2249_p3 = pnand %p2247_p2, %p2203_p6  ;;  %p2255_p7 = scmp.lt.s32.totalorder %s2253_s9, %s2246_s3 }
  0xf8   : > { %p2250_p0 = pneg %p2249_p3  ;;  %p2256_p5 = por %p2255_p7, %p2254_p9 }
  0xfa   : > { %p2257_p12 = pnand %p2256_p5, %p2250_p0 }
  0xfc   : > { %2260 = shalt.err (!%p2257_p12)
}
  0xfd   : > { %1920 = dma.hbm_to_vmem [thread:$0]  (!%p2856_p10), %s2863_s1, 512, %s2898_s19, %s523_s2, %s3410_s10, %s3410_s10, %s3409_s8  }
  0xfe   : > { %p3426_p6 = scmp.ne.s32.totalorder %s3400_s20, 0 }
  0xff   : > { %s2932_s11 = sand.u32 (!%p3426_p6), 1, %s2411_s0   ;;  %p3427_p4 = scmp.ne.s32.totalorder (!%p3426_p6), %s3395_s17, 0 }
 0x100   : > { %548 = sbr.rel (%p3426_p6) target bundleno = 1322 (0x52a), region = 64  ;;  %s2935_s15 = sshll.u32 (!%p3426_p6), %s2932_s11, 4 }
 0x101   : > { %s551_s26 = scalar_lea.sflag (!%p3426_p6), [#allocation6], %s2932_s11  ;;  %s554_s18 = scalar_lea.vmem (!%p3426_p6), [#allocation5], %s2935_s15 }
 0x107   : > { %2362 = dma.done.wait (%p3427_p4), %s551_s26, 256  }
 0x108   : > { %2364 = vsyncadd (%p3427_p4), %s551_s26, 4294967040  ;;  %s3428_s22 = sld [smem:[#allocation31_spill]]  ;;  %s563_s10 = scalar_lea.vmem [#allocation8], %s2935_s15 }
 0x10e   : > { %s559_s20 = sand.u32 1, %s3428_s22  }
 0x10f   : > { %s560_s8 = scalar_lea.sflag [#allocation9], %s559_s20 }
 0x110   : > { %2366 = dma.done.wait (%p3427_p4), %s560_s8, 512  }
 0x111   : > { %2368 = vsyncadd (%p3427_p4), %s560_s8, 4294966784  ;;  %s572_s1 = scalar_lea.vmem [#allocation10], %s2935_s15  ;;  %s578_s19 = scalar_lea.sflag [#allocation12], %s559_s20 }
 0x112   : > { %s581_s2 = scalar_lea.vmem [#allocation11], %s2935_s15 }
 0x113   : > { %2370 = dma.done.wait (%p3427_p4), %s578_s19, 256  }
 0x114   : > { %2372 = vsyncadd (%p3427_p4), %s578_s19, 4294967040  ;;  %s3429_s12 = sld [smem:[#allocation32_spill]]  ;;  %s588_s7 = sand.u32 1, %s2399_s24  }
 0x115   : > { %s1829_s4 = sshll.u32 %s588_s7, 5 }
 0x116   : > { %s2956_s3 = scalar_lea.vmem [#allocation13], %s1829_s4 }
 0x11a   : > { %p3430_p10 = scmp.ne.s32.totalorder %s3429_s12, 0 }
 0x11c   : > { %2374 = dma.done.wait (%p3430_p10), %s578_s19, 512  }
 0x11d   : > { %2376 = vsyncadd (%p3430_p10), %s578_s19, 4294966784  ;;  %s596_s23 = scalar_lea.sflag [#allocation15], %s559_s20  ;;  %s2962_s29 = scalar_lea.vmem [#allocation14], %s1829_s4 }
 0x11e   : > { %2378 = dma.done.wait (%p3430_p10), %s596_s23, 512  }
 0x11f   : > { %2380 = vsyncadd (%p3430_p10), %s596_s23, 4294966784  ;;  %p3431_p11 = scmp.eq.s32.totalorder %s3428_s22, 0 }
 0x121   : > { %2382 = dma.done.wait (%p3431_p11), [#allocation15], 2048   ;;  %p3432_p8 = pmov %p3431_p11 }
 0x122   : > { %s2973_s17 = scalar_lea.vmem [#allocation17], %s2935_s15  ;;  %s2976_s9 = scalar_lea.vmem [#allocation18], %s2935_s15 }
 0x123   : > { %2384 = vsyncadd (%p3432_p8), [#allocation15], 4294965248  ;;  %s3433_s26 = sld [smem:[#allocation29_spill]] }
 0x129   : > { %p1834_p1 = scmp.ne.s32.totalorder %s3433_s26, 0 }
 0x12a   : > { %v2446_v0 = vmov (!%p1834_p1), 0.0  }
 0x12b   : > { %680 = sbr.rel (%p1834_p1) target bundleno = 306 (0x132), region = 96  ;;  %681 = vst [vmem:[#allocation2] sm:$0xff] (!%p1834_p1), %v2446_v0  ;;  %682 = vst [vmem:[#allocation2 + $0x8] sm:$0xff] (!%p1834_p1), %v2446_v0 }
 0x12c   : > { %683 = vst [vmem:[#allocation3] sm:$0xff] (!%p1834_p1), %v2446_v0  ;;  %684 = vst [vmem:[#allocation3 + $0x8] sm:$0xff] (!%p1834_p1), %v2446_v0 }
 0x132 PF: > { %v2979_v1 = vld [vmem:[#allocation16 + $0x4] ss:$8 sps:$4 sm:$0xff]   ;;  %v2981_v2 = vld [vmem:[#allocation16] ss:$8 sps:$4 sm:$0xff]   ;;  %v2447_v3 = vmov 0   ;;  %v3082_v33 = vld [vmem:[%s2956_s3 + $0x10] sm:$0xff] }
 0x133   : > { %857 = vmatprep.mubr.bf16.mxu0 %v2447_v3  ;;  %912 = vmatprep.mubr.bf16.mxu1 %v2447_v3  ;;  %v2987_v4 = vld [vmem:[#allocation16 + $0x14] ss:$8 sps:$4 sm:$0xff]   ;;  %v2991_v5 = vld [vmem:[#allocation16 + $0x10] ss:$8 sps:$4 sm:$0xff]   ;;  %v2995_v6 = vld [vmem:[#allocation16 + $0x24] ss:$8 sps:$4 sm:$0xff]  }
 0x134   : > { %825 = vmatprep.subr.bf16.mxu0 %v2979_v1  ;;  %880 = vmatprep.subr.bf16.mxu1 %v2979_v1  ;;  %v2999_v7 = vld [vmem:[#allocation16 + $0x20] ss:$8 sps:$4 sm:$0xff]   ;;  %v3003_v8 = vld [vmem:[#allocation16 + $0x34] ss:$8 sps:$4 sm:$0xff]   ;;  %v3007_v9 = vld [vmem:[#allocation16 + $0x30] ss:$8 sps:$4 sm:$0xff]  }
 0x135   : > { %826 = vmatpush1.bf16.msra.mxu0 %v2981_v2  ;;  %881 = vmatpush1.bf16.msra.mxu1 %v2981_v2  ;;  %v3011_v10 = vld [vmem:[#allocation16 + $0x44] ss:$8 sps:$4 sm:$0xff]   ;;  %v3013_v11 = vld [vmem:[#allocation16 + $0x40] ss:$8 sps:$4 sm:$0xff]   ;;  %v3019_v12 = vld [vmem:[#allocation16 + $0x54] ss:$8 sps:$4 sm:$0xff]  }
 0x136   : > { %827 = vmatprep.subr.bf16.mxu0 %v2987_v4  ;;  %882 = vmatprep.subr.bf16.mxu1 %v2987_v4  ;;  %v3023_v13 = vld [vmem:[%s554_s18] sm:$0xff]  ;;  %v3027_v14 = vld [vmem:[%s554_s18 + $0x8] sm:$0xff]  ;;  %s3434_s20 = sld [smem:[#allocation42_spill]]  ;;  %vm950_vm0 = vcmask 130048   ;;  %s3435_s19 = sld [smem:[#allocation43_spill]] }
 0x137   : > { %v3031_v15 = vld [vmem:[%s563_s10] sm:$0xff]  ;;  %v3037_v17 = vld [vmem:[%s2956_s3 + $0x8] sm:$0xff]  ;;  %v3085_v34 = vld [vmem:[%s2956_s3 + $0x18] sm:$0xff]  ;;  %v721_v42 = vmul.f32 %v3082_v33, %v3023_v13  ;;  %s3436_s4 = sld [smem:[#allocation41_spill]] }
 0x138   : > { %v3034_v16 = vld [vmem:[%s2956_s3] sm:$0xff]  ;;  %v3044_v19 = vld [vmem:[#allocation16 + $0x50] ss:$8 sps:$4 sm:$0xff]   ;;  %v3051_v21 = vld [vmem:[%s2962_s29 + $0x8] sm:$0xff]  ;;  %v720_v24 = vmul.f32 %v3037_v17, %v3027_v14  ;;  %v722_v43 = vmul.f32 %v3085_v34, %v3027_v14  ;;  %v733_v46 = vmul.f32 %v3082_v33, %v3031_v15 }
 0x139   : > { %828 = vmatpush1.bf16.msra.mxu0 %v2991_v5  ;;  %883 = vmatpush1.bf16.msra.mxu1 %v2991_v5  ;;  %v3040_v18 = vld [vmem:[%s2962_s29] sm:$0xff]  ;;  %v3048_v20 = vld [vmem:[%s563_s10 + $0x8] sm:$0xff]  ;;  %v719_v23 = vmul.f32 %v3034_v16, %v3023_v13  ;;  %v731_v26 = vmul.f32 %v3034_v16, %v3031_v15  ;;  %v736_v30 = vmul.f32 %v3051_v21, %v3027_v14  ;;  %v3088_v39 = vld [vmem:[%s2962_s29 + $0x10] sm:$0xff] }
 0x13a   : > { %829 = vmatprep.subr.bf16.mxu0 %v2995_v6  ;;  %884 = vmatprep.subr.bf16.mxu1 %v2995_v6  ;;  %v3055_v22 = vld [vmem:[#allocation16 + $0x64] ss:$8 sps:$4 sm:$0xff]   ;;  %v723_v25 = vmul.f32 %v3040_v18, %v3031_v15  ;;  %v724_v27 = vmul.f32 %v3051_v21, %v3048_v20  ;;  %v732_v28 = vmul.f32 %v3037_v17, %v3048_v20  ;;  %v3075_v31 = vld [vmem:[#allocation16 + $0x60] ss:$8 sps:$4 sm:$0xff]   ;;  %v3079_v32 = vld [vmem:[#allocation16 + $0x74] ss:$8 sps:$4 sm:$0xff]  }
 0x13b   : > { %v735_v29 = vmul.f32 %v3040_v18, %v3023_v13  ;;  %v3091_v40 = vld [vmem:[%s2962_s29 + $0x18] sm:$0xff]  ;;  %v725_v44 = vmul.f32 %v3088_v39, %v3031_v15  ;;  %v734_v47 = vmul.f32 %v3085_v34, %v3048_v20  ;;  %v737_v50 = vmul.f32 %v3088_v39, %v3023_v13  ;;  %s3437_s29 = sld [smem:[#allocation29_spill]] }
 0x13c   : > { %v727_v35 = vsub.f32 %v719_v23, %v723_v25  ;;  %v728_v36 = vsub.f32 %v720_v24, %v724_v27  ;;  %v740_v38 = vadd.f32 %v736_v30, %v732_v28  ;;  %v3095_v41 = vld [vmem:[#allocation16 + $0x70] ss:$8 sps:$4 sm:$0xff]   ;;  %v726_v45 = vmul.f32 %v3091_v40, %v3048_v20 }
 0x13d   : > { %830 = vmatpush1.bf16.msra.mxu0 %v2999_v7  ;;  %885 = vmatpush1.bf16.msra.mxu1 %v2999_v7  ;;  %v739_v37 = vadd.f32 %v735_v29, %v731_v26  ;;  %v738_v51 = vmul.f32 %v3091_v40, %v3027_v14  ;;  %v729_v52 = vsub.f32 %v721_v42, %v725_v44 }
 0x13e   : > { %831 = vmatprep.subr.bf16.mxu0 %v3003_v8  ;;  %886 = vmatprep.subr.bf16.mxu1 %v3003_v8  ;;  %v743_v48 = vpack.c.bf16 %v728_v36, %v727_v35  ;;  %v730_v53 = vsub.f32 %v722_v43, %v726_v45  ;;  %v741_v54 = vadd.f32 %v737_v50, %v733_v46  ;;  %v3124_v36 = vld [vmem:[%s3434_s20] sm:$0xff]  }
 0x13f   : > { %v878_v49 = vpack.c.bf16 %v740_v38, %v739_v37  ;;  %v742_v55 = vadd.f32 %v738_v51, %v734_v47 }
 0x140   : > { %v744_v56 = vpack.c.bf16 %v730_v53, %v729_v52  ;;  %v3132_v52 = vld [vmem:[%s3435_s19] sm:$0xff]  }
 0x141   : > { %832 = vmatpush1.bf16.msra.mxu0 %v3007_v9  ;;  %887 = vmatpush1.bf16.msra.mxu1 %v3007_v9  ;;  %v879_v57 = vpack.c.bf16 %v742_v55, %v741_v54  ;;  %p1861_p13 = scmp.ne.s32.totalorder %s3437_s29, 1 }
 0x142   : > { %833 = vmatprep.subr.bf16.mxu0 %v3011_v10  ;;  %888 = vmatprep.subr.bf16.mxu1 %v3011_v10  ;;  %s1496_s26 = sld [smem:[#allocation4]] (!%p1861_p13) }
 0x145   : > { %834 = vmatpush1.bf16.msra.mxu0 %v3013_v11  ;;  %889 = vmatpush1.bf16.msra.mxu1 %v3013_v11 }
 0x146   : > { %835 = vmatprep.subr.bf16.mxu0 %v3019_v12  ;;  %890 = vmatprep.subr.bf16.mxu1 %v3019_v12 }
 0x149   : > { %836 = vmatpush1.bf16.msra.mxu0 %v3044_v19  ;;  %891 = vmatpush1.bf16.msra.mxu1 %v3044_v19 }
 0x14a   : > { %837 = vmatprep.subr.bf16.mxu0 %v3055_v22  ;;  %892 = vmatprep.subr.bf16.mxu1 %v3055_v22 }
 0x14d   : > { %838 = vmatpush1.bf16.msra.mxu0 %v3075_v31  ;;  %893 = vmatpush1.bf16.msra.mxu1 %v3075_v31 }
 0x14e   : > { %839 = vmatprep.subr.bf16.mxu0 %v3079_v32  ;;  %894 = vmatprep.subr.bf16.mxu1 %v3079_v32 }
 0x151   : > { %840 = vmatpush1.bf16.msra.mxu0 %v3095_v41  ;;  %895 = vmatpush1.bf16.msra.mxu1 %v3095_v41 }
 0x154   : > { %858 = vmatmul.mubr.bf16.vlgmr.msra.gmra.mrb[0].mxu0 %v743_v48  ;;  %913 = vmatmul.mubr.bf16.vlgmr.msra.gmra.mrb[0].mxu1 %v878_v49 }
 0x155   : > { %867 = vmatprep.mubr.bf16.mxu0 %v2447_v3  ;;  %922 = vmatprep.mubr.bf16.mxu1 %v2447_v3 }
 0x15c   : > { %868 = vmatmul.mubr.bf16.gmra.mrb[4].mxu0 %v744_v56  ;;  %923 = vmatmul.mubr.bf16.gmra.mrb[4].mxu1 %v879_v57 }
 0x15d   : > { %986 = vmatprep.mubr.bf16.mxu0 %v2447_v3  ;;  %1029 = vmatprep.mubr.bf16.mxu1 %v2447_v3 }
 0x227   : > { %v859_v58 = vpop.f32.mrb[0].mxu0  ;;  %v914_v59 = vpop.f32.mrb[0].mxu1 }
 0x228   : > { %v861_v60 = vpop.f32.mrb[1].mxu0  ;;  %v916_v61 = vpop.f32.mrb[1].mxu1 }
 0x229   : > { %v937_v62 = vadd.f32 %v914_v59, %v861_v60  ;;  %v933_v63 = vsub.f32 %v859_v58, %v916_v61  ;;  %v863_v0 = vpop.f32.mrb[2].mxu0  ;;  %v918_v23 = vpop.f32.mrb[2].mxu1 }
 0x22a   : > { %v865_v24 = vpop.f32.mrb[3].mxu0  ;;  %v920_v25 = vpop.f32.mrb[3].mxu1 }
 0x22b   : > { %v938_v26 = vadd.f32 %v918_v23, %v865_v24  ;;  %v934_v27 = vsub.f32 %v863_v0, %v920_v25  ;;  %v718_v0 = vld [vmem:[%s3436_s4 + $0x8] sm:$0xff] }
 0x22d   : > { %v943_v28 = vpack.c.bf16 %v938_v26, %v937_v62  ;;  %v941_v29 = vpack.c.bf16 %v934_v27, %v933_v63  ;;  %v717_v62 = vld [vmem:[%s3436_s4] sm:$0xff] }
 0x22f   : > { %v869_v30 = vpop.f32.mrb[4].mxu0  ;;  %v924_v35 = vpop.f32.mrb[4].mxu1  ;;  %954 = vmatprep.subr.bf16.mxu0 %v943_v28 }
 0x230   : > { %v871_v37 = vpop.f32.mrb[5].mxu0  ;;  %v926_v38 = vpop.f32.mrb[5].mxu1  ;;  %955 = vmatpush1.bf16.msra.mxu0 %v941_v29 }
 0x231   : > { %v939_v42 = vadd.f32 %v924_v35, %v871_v37  ;;  %v935_v43 = vsub.f32 %v869_v30, %v926_v38  ;;  %v873_v44 = vpop.f32.mrb[6].mxu0  ;;  %v928_v45 = vpop.f32.mrb[6].mxu1  ;;  %1048 = vmatprep.subr.bf16.mxu0 %v943_v28 }
 0x232   : > { %v875_v46 = vpop.f32.mrb[7].mxu0  ;;  %v930_v47 = vpop.f32.mrb[7].mxu1 }
 0x233   : > { %v940_v48 = vadd.f32 %v928_v45, %v875_v46  ;;  %v936_v49 = vsub.f32 %v873_v44, %v930_v47  ;;  %1852 = vmatmul.mubr.msk.bf16.vlgmr.msra.gmra.mrb[8].mxu0 %vm950_vm0, %v3124_v36 }
 0x234   : > { %1049 = vmatpush1.bf16.msra.mxu0 %v941_v29  ;;  %1080 = vmatprep.mubr.bf16.mxu0 %v2447_v3 }
 0x235   : > { %v944_v50 = vpack.c.bf16 %v940_v48, %v939_v42  ;;  %v942_v51 = vpack.c.bf16 %v936_v49, %v935_v43 }
 0x237   : > { %997 = vmatprep.subr.bf16.mxu1 %v944_v50 }
 0x238   : > { %998 = vmatpush1.bf16.msra.mxu1 %v942_v51 }
 0x239   : > { %1091 = vmatprep.subr.bf16.mxu1 %v944_v50 }
 0x23b   : > { %1853 = vmatmul.mubr.msk.bf16.vlgmr.msra.gmra.mrb[8].mxu1 %vm950_vm0, %v3124_v36  ;;  %1855 = vmatmul.mubr.msk.bf16.vlgmr.msra.gmra.mrb[12].mxu0 %vm950_vm0, %v3132_v52 }
 0x23c   : > { %1092 = vmatpush1.bf16.msra.mxu1 %v942_v51  ;;  %1123 = vmatprep.mubr.bf16.mxu1 %v2447_v3 }
 0x23d   : > { %1186 = vmatprep.mubr.bf16.mxu0 %v2447_v3 }
 0x243   : > { %1856 = vmatmul.mubr.msk.bf16.vlgmr.msra.gmra.mrb[12].mxu1 %vm950_vm0, %v3132_v52 }
 0x244   : > { %1229 = vmatprep.mubr.bf16.mxu1 %v2447_v3 }
 0x306   : > { %v988_v53 = vpop.f32.mrb[8].mxu0 }
 0x307   : > { %v990_v54 = vpop.f32.mrb[9].mxu0 }
 0x308   : > { %v992_v55 = vpop.f32.mrb[10].mxu0 }
 0x309   : > { %v994_v56 = vpop.f32.mrb[11].mxu0 }
 0x30e   : > { %v1082_v57 = vpop.f32.mrb[12].mxu0  ;;  %v1031_v58 = vpop.f32.mrb[8].mxu1 }
 0x30f   : > { %v1138_v59 = vadd.f32 %v1082_v57, %v990_v54  ;;  %v1084_v60 = vpop.f32.mrb[13].mxu0  ;;  %v1033_v61 = vpop.f32.mrb[9].mxu1 }
 0x310   : > { %v1134_v63 = vsub.f32 %v988_v53, %v1084_v60  ;;  %v1086_v23 = vpop.f32.mrb[14].mxu0  ;;  %v1035_v24 = vpop.f32.mrb[10].mxu1 }
 0x311   : > { %v1139_v25 = vadd.f32 %v1086_v23, %v994_v56  ;;  %v1088_v26 = vpop.f32.mrb[15].mxu0  ;;  %v1037_v27 = vpop.f32.mrb[11].mxu1  ;;  %v1146_v29 = vmul.f32 %v1138_v59, %v717_v62 }
 0x312   : > { %v1135_v28 = vsub.f32 %v992_v55, %v1088_v26  ;;  %v1142_v35 = vmul.f32 %v1134_v63, %v717_v62 }
 0x313   : > { %v1147_v30 = vmul.f32 %v1139_v25, %v718_v0 }
 0x314   : > { %v1143_v37 = vmul.f32 %v1135_v28, %v718_v0 }
 0x315   : > { %v1152_v38 = vpack.c.bf16 %v1147_v30, %v1146_v29 }
 0x316   : > { %v1150_v42 = vpack.c.bf16 %v1143_v37, %v1142_v35  ;;  %v1125_v43 = vpop.f32.mrb[12].mxu1 }
 0x317   : > { %v1140_v44 = vadd.f32 %v1125_v43, %v1033_v61  ;;  %v1127_v45 = vpop.f32.mrb[13].mxu1  ;;  %1154 = vmatprep.subr.bf16.mxu0 %v1152_v38 }
 0x318   : > { %v1136_v46 = vsub.f32 %v1031_v58, %v1127_v45  ;;  %v1129_v47 = vpop.f32.mrb[14].mxu1  ;;  %1155 = vmatpush1.bf16.msra.mxu0 %v1150_v42 }
 0x319   : > { %v1141_v48 = vadd.f32 %v1129_v47, %v1037_v27  ;;  %v1131_v49 = vpop.f32.mrb[15].mxu1  ;;  %1240 = vmatprep.subr.bf16.mxu0 %v1152_v38  ;;  %v1148_v51 = vmul.f32 %v1140_v44, %v717_v62 }
 0x31a   : > { %v1137_v50 = vsub.f32 %v1035_v24, %v1131_v49  ;;  %v1144_v54 = vmul.f32 %v1136_v46, %v717_v62 }
 0x31b   : > { %v1149_v53 = vmul.f32 %v1141_v48, %v718_v0  ;;  %1857 = vmatmul.mubr.msk.bf16.vlgmr.msra.gmra.mrb[16].mxu0 %vm950_vm0, %v3124_v36 }
 0x31c   : > { %v1145_v55 = vmul.f32 %v1137_v50, %v718_v0  ;;  %1241 = vmatpush1.bf16.msra.mxu0 %v1150_v42  ;;  %1272 = vmatprep.mubr.bf16.mxu0 %v2447_v3 }
 0x31d   : > { %v1153_v56 = vpack.c.bf16 %v1149_v53, %v1148_v51  ;;  %1336 = vmatprep.subr.bf16.mxu0 %v2979_v1 }
 0x31e   : > { %v1151_v57 = vpack.c.bf16 %v1145_v55, %v1144_v54 }
 0x31f   : > { %1197 = vmatprep.subr.bf16.mxu1 %v1153_v56 }
 0x320   : > { %1198 = vmatpush1.bf16.msra.mxu1 %v1151_v57 }
 0x321   : > { %1283 = vmatprep.subr.bf16.mxu1 %v1153_v56 }
 0x323   : > { %1858 = vmatmul.mubr.msk.bf16.vlgmr.msra.gmra.mrb[16].mxu1 %vm950_vm0, %v3124_v36  ;;  %1859 = vmatmul.mubr.msk.bf16.vlgmr.msra.gmra.mrb[20].mxu0 %vm950_vm0, %v3132_v52 }
 0x324   : > { %1284 = vmatpush1.bf16.msra.mxu1 %v1151_v57  ;;  %1315 = vmatprep.mubr.bf16.mxu1 %v2447_v3 }
 0x325   : > { %1391 = vmatprep.subr.bf16.mxu1 %v2979_v1  ;;  %1337 = vmatpush1.bf16.msra.mxu0 %v2981_v2 }
 0x326   : > { %1338 = vmatprep.subr.bf16.mxu0 %v2987_v4  ;;  %1368 = vmatprep.mubr.bf16.mxu0 %v2447_v3 }
 0x329   : > { %1339 = vmatpush1.bf16.msra.mxu0 %v2991_v5 }
 0x32a   : > { %1340 = vmatprep.subr.bf16.mxu0 %v2995_v6 }
 0x32b   : > { %1860 = vmatmul.mubr.msk.bf16.vlgmr.msra.gmra.mrb[20].mxu1 %vm950_vm0, %v3132_v52 }
 0x32c   : > { %1392 = vmatpush1.bf16.msra.mxu1 %v2981_v2  ;;  %1423 = vmatprep.mubr.bf16.mxu1 %v2447_v3 }
 0x32d   : > { %1393 = vmatprep.subr.bf16.mxu1 %v2987_v4  ;;  %1341 = vmatpush1.bf16.msra.mxu0 %v2999_v7 }
 0x32e   : > { %1342 = vmatprep.subr.bf16.mxu0 %v3003_v8 }
 0x330   : > { %1394 = vmatpush1.bf16.msra.mxu1 %v2991_v5 }
 0x331   : > { %1395 = vmatprep.subr.bf16.mxu1 %v2995_v6  ;;  %1343 = vmatpush1.bf16.msra.mxu0 %v3007_v9 }
 0x332   : > { %1344 = vmatprep.subr.bf16.mxu0 %v3011_v10 }
 0x334   : > { %1396 = vmatpush1.bf16.msra.mxu1 %v2999_v7 }
 0x335   : > { %1397 = vmatprep.subr.bf16.mxu1 %v3003_v8  ;;  %1345 = vmatpush1.bf16.msra.mxu0 %v3013_v11 }
 0x336   : > { %1346 = vmatprep.subr.bf16.mxu0 %v3019_v12 }
 0x338   : > { %1398 = vmatpush1.bf16.msra.mxu1 %v3007_v9 }
 0x339   : > { %1399 = vmatprep.subr.bf16.mxu1 %v3011_v10  ;;  %1347 = vmatpush1.bf16.msra.mxu0 %v3044_v19 }
 0x33a   : > { %1348 = vmatprep.subr.bf16.mxu0 %v3055_v22 }
 0x33c   : > { %1400 = vmatpush1.bf16.msra.mxu1 %v3013_v11 }
 0x33d   : > { %1401 = vmatprep.subr.bf16.mxu1 %v3019_v12  ;;  %1349 = vmatpush1.bf16.msra.mxu0 %v3075_v31 }
 0x33e   : > { %1350 = vmatprep.subr.bf16.mxu0 %v3079_v32 }
 0x340   : > { %1402 = vmatpush1.bf16.msra.mxu1 %v3044_v19 }
 0x341   : > { %1403 = vmatprep.subr.bf16.mxu1 %v3055_v22  ;;  %1351 = vmatpush1.bf16.msra.mxu0 %v3095_v41 }
 0x344   : > { %1404 = vmatpush1.bf16.msra.mxu1 %v3075_v31 }
 0x345   : > { %1405 = vmatprep.subr.bf16.mxu1 %v3079_v32 }
 0x348   : > { %1406 = vmatpush1.bf16.msra.mxu1 %v3095_v41 }
 0x3ee   : > { %v1188_v1 = vpop.f32.mrb[16].mxu0 }
 0x3ef   : > { %v1190_v2 = vpop.f32.mrb[17].mxu0 }
 0x3f0   : > { %v1192_v4 = vpop.f32.mrb[18].mxu0 }
 0x3f1   : > { %v1194_v5 = vpop.f32.mrb[19].mxu0 }
 0x3f6   : > { %v1274_v6 = vpop.f32.mrb[20].mxu0  ;;  %v1231_v7 = vpop.f32.mrb[16].mxu1 }
 0x3f7   : > { %v1330_v8 = vsub.f32 %v1190_v2, %v1274_v6  ;;  %v1276_v9 = vpop.f32.mrb[21].mxu0  ;;  %v1233_v10 = vpop.f32.mrb[17].mxu1 }
 0x3f8   : > { %v1326_v11 = vadd.f32 %v1276_v9, %v1188_v1  ;;  %v1278_v12 = vpop.f32.mrb[22].mxu0  ;;  %v1235_v19 = vpop.f32.mrb[18].mxu1 }
 0x3f9   : > { %v1331_v22 = vsub.f32 %v1194_v5, %v1278_v12  ;;  %v1280_v36 = vpop.f32.mrb[23].mxu0  ;;  %v1237_v52 = vpop.f32.mrb[19].mxu1 }
 0x3fa   : > { %v1327_v31 = vadd.f32 %v1280_v36, %v1192_v4 }
 0x3fb   : > { %v1389_v58 = vpack.c.bf16 %v1331_v22, %v1330_v8 }
 0x3fc   : > { %v1334_v32 = vpack.c.bf16 %v1327_v31, %v1326_v11 }
 0x3fd   : > { %1424 = vmatmul.mubr.bf16.vlgmr.msra.gmra.mrb[24].mxu1 %v1389_v58 }
 0x3fe   : > { %v1317_v41 = vpop.f32.mrb[20].mxu1  ;;  %1369 = vmatmul.mubr.bf16.vlgmr.msra.gmra.mrb[24].mxu0 %v1334_v32  ;;  %1433 = vmatprep.mubr.bf16.mxu1 %v2447_v3 }
 0x3ff   : > { %v1332_v59 = vsub.f32 %v1233_v10, %v1317_v41  ;;  %v1319_v60 = vpop.f32.mrb[21].mxu1  ;;  %1378 = vmatprep.mubr.bf16.mxu0 %v2447_v3  ;;  %v1452_v41 = vld [vmem:[#allocation2] sm:$0xff] }
 0x400   : > { %v1328_v61 = vadd.f32 %v1319_v60, %v1231_v7  ;;  %v1321_v62 = vpop.f32.mrb[22].mxu1 }
 0x401   : > { %v1333_v63 = vsub.f32 %v1237_v52, %v1321_v62  ;;  %v1323_v0 = vpop.f32.mrb[23].mxu1 }
 0x402   : > { %v1329_v23 = vadd.f32 %v1323_v0, %v1235_v19  ;;  %v1473_v0 = vld [vmem:[#allocation3 + $0x8] sm:$0xff] }
 0x403   : > { %v1390_v24 = vpack.c.bf16 %v1333_v63, %v1332_v59  ;;  %v1472_v59 = vld [vmem:[#allocation3] sm:$0xff] }
 0x404   : > { %v1335_v25 = vpack.c.bf16 %v1329_v23, %v1328_v61 }
 0x405   : > { %1434 = vmatmul.mubr.bf16.gmra.mrb[28].mxu1 %v1390_v24 }
 0x406   : > { %1379 = vmatmul.mubr.bf16.gmra.mrb[28].mxu0 %v1335_v25 }
 0x4d0   : > { %v1425_v26 = vpop.f32.mrb[24].mxu1 }
 0x4d1   : > { %v1370_v27 = vpop.f32.mrb[24].mxu0  ;;  %v1427_v28 = vpop.f32.mrb[25].mxu1 }
 0x4d2   : > { %v1444_v29 = vadd.f32 %v1427_v28, %v1370_v27  ;;  %v1372_v30 = vpop.f32.mrb[25].mxu0  ;;  %v1429_v35 = vpop.f32.mrb[26].mxu1 }
 0x4d3   : > { %v1448_v37 = vsub.f32 %v1425_v26, %v1372_v30  ;;  %v1374_v38 = vpop.f32.mrb[26].mxu0  ;;  %v1431_v42 = vpop.f32.mrb[27].mxu1 }
 0x4d4   : > { %v1454_v3 = vmul.f32 %v1444_v29, %v3034_v16  ;;  %v1478_v43 = vmul.f32 %v1444_v29, %v3040_v18  ;;  %v1445_v44 = vadd.f32 %v1431_v42, %v1374_v38  ;;  %v1376_v45 = vpop.f32.mrb[27].mxu0  ;;  %v1500_v29 = vld [vmem:[%s572_s1 + $0x8] sm:$0xff] (!%p1861_p13) }
 0x4d5   : > { %v1458_v46 = vmul.f32 %v1448_v37, %v3040_v18  ;;  %v1474_v47 = vmul.f32 %v1448_v37, %v3034_v16  ;;  %v1449_v48 = vsub.f32 %v1429_v35, %v1376_v45  ;;  %v1512_v35 = vld [vmem:[%s581_s2] sm:$0xff] (!%p1861_p13)  ;;  %v1513_v38 = vld [vmem:[%s581_s2 + $0x8] sm:$0xff] (!%p1861_p13)  ;;  %v1503_v45 = vstv (!%p1861_p13), %s1496_s26 }
 0x4d6   : > { %v1455_v49 = vmul.f32 %v1445_v44, %v3037_v17  ;;  %v1479_v50 = vmul.f32 %v1445_v44, %v3051_v21 }
 0x4d7   : > { %v1462_v51 = vadd.f32 %v1458_v46, %v1454_v3  ;;  %v1482_v53 = vsub.f32 %v1474_v47, %v1478_v43  ;;  %v1459_v54 = vmul.f32 %v1449_v48, %v3051_v21  ;;  %v1475_v55 = vmul.f32 %v1449_v48, %v3037_v17 }
 0x4d8   : > { %v1435_v56 = vpop.f32.mrb[28].mxu1 }
 0x4d9   : > { %v1463_v57 = vadd.f32 %v1459_v54, %v1455_v49  ;;  %v1483_v1 = vsub.f32 %v1475_v55, %v1479_v50  ;;  %v1380_v2 = vpop.f32.mrb[28].mxu0  ;;  %v1437_v4 = vpop.f32.mrb[29].mxu1 }
 0x4da   : > { %v1446_v5 = vadd.f32 %v1437_v4, %v1380_v2  ;;  %v1382_v18 = vpop.f32.mrb[29].mxu0  ;;  %v1439_v6 = vpop.f32.mrb[30].mxu1 }
 0x4db   : > { %v1450_v16 = vsub.f32 %v1435_v56, %v1382_v18  ;;  %v1384_v7 = vpop.f32.mrb[30].mxu0  ;;  %v1441_v8 = vpop.f32.mrb[31].mxu1 }
 0x4dc   : > { %v1456_v9 = vmul.f32 %v1446_v5, %v3082_v33  ;;  %v1480_v10 = vmul.f32 %v1446_v5, %v3088_v39  ;;  %v1447_v11 = vadd.f32 %v1441_v8, %v1384_v7  ;;  %v1386_v12 = vpop.f32.mrb[31].mxu0 }
 0x4dd   : > { %v1460_v21 = vmul.f32 %v1450_v16, %v3088_v39  ;;  %v1476_v17 = vmul.f32 %v1450_v16, %v3082_v33  ;;  %v1451_v19 = vsub.f32 %v1439_v6, %v1386_v12  ;;  %v1453_v39 = vld [vmem:[#allocation2 + $0x8] sm:$0xff] }
 0x4de   : > { %v1457_v22 = vmul.f32 %v1447_v11, %v3085_v34  ;;  %v1481_v36 = vmul.f32 %v1447_v11, %v3091_v40 }
 0x4df   : > { %v1464_v52 = vadd.f32 %v1460_v21, %v1456_v9  ;;  %v1484_v31 = vsub.f32 %v1476_v17, %v1480_v10  ;;  %v1461_v58 = vmul.f32 %v1451_v19, %v3091_v40  ;;  %v1477_v32 = vmul.f32 %v1451_v19, %v3085_v34  ;;  %v1499_v40 = vld [vmem:[%s572_s1] sm:$0xff] (!%p1861_p13) }
 0x4e1   : > { %v1466_v60 = vadd.f32 %v1464_v52, %v1462_v51  ;;  %v1486_v61 = vadd.f32 %v1484_v31, %v1482_v53  ;;  %v1465_v62 = vadd.f32 %v1461_v58, %v1457_v22  ;;  %v1485_v63 = vsub.f32 %v1477_v32, %v1481_v36  ;;  %1495 = sbr.rel (%p1861_p13) target bundleno = 1270 (0x4f6), region = 100 }
 0x4e3   : > { %v1468_v33 = vadd.f32 %v1466_v60, %v1452_v41  ;;  %v1488_v23 = vadd.f32 %v1486_v61, %v1472_v59  ;;  %v1467_v24 = vadd.f32 %v1465_v62, %v1463_v57  ;;  %v1487_v25 = vadd.f32 %v1485_v63, %v1483_v1 }
 0x4e5   : > { %1470 = vst [vmem:[#allocation2] sm:$0xff] %v1468_v33  ;;  %1490 = vst [vmem:[#allocation3] sm:$0xff] %v1488_v23  ;;  %v1469_v26 = vadd.f32 %v1467_v24, %v1453_v39  ;;  %v1489_v27 = vadd.f32 %v1487_v25, %v1473_v0 }
 0x4e7   : > { %1471 = vst [vmem:[#allocation2 + $0x8] sm:$0xff] %v1469_v26  ;;  %1491 = vst [vmem:[#allocation3 + $0x8] sm:$0xff] %v1489_v27 }
 0x4ec   : > { %v1497_v34 = vld [vmem:[#allocation2] sm:$0xff]  ;;  %v1510_v30 = vld [vmem:[#allocation3] sm:$0xff] }
 0x4ed   : > { %v1501_v42 = vsub.f32 %v1497_v34, %v1499_v40  ;;  %v1514_v43 = vsub.f32 %v1510_v30, %v1512_v35 }
 0x4ee   : > { %v1498_v28 = vld [vmem:[#allocation2 + $0x8] sm:$0xff]  ;;  %v1511_v37 = vld [vmem:[#allocation3 + $0x8] sm:$0xff] }
 0x4ef   : > { %v1502_v3 = vsub.f32 %v1498_v28, %v1500_v29  ;;  %v1515_v44 = vsub.f32 %v1511_v37, %v1513_v38  ;;  %v1504_v46 = vmul.f32 %v1503_v45, %v1501_v42  ;;  %v1516_v48 = vmul.f32 %v1514_v43, %v1503_v45 }
 0x4f1   : > { %v1505_v47 = vmul.f32 %v1503_v45, %v1502_v3  ;;  %v1517_v49 = vmul.f32 %v1515_v44, %v1503_v45  ;;  %v1506_v50 = vsub.f32 %v3023_v13, %v1504_v46  ;;  %v1518_v53 = vsub.f32 %v3031_v15, %v1516_v48 }
 0x4f3   : > { %v1507_v51 = vsub.f32 %v3027_v14, %v1505_v47  ;;  %v1519_v54 = vsub.f32 %v3048_v20, %v1517_v49  ;;  %1508 = vst [vmem:[%s2973_s17] sm:$0xff] %v1506_v50  ;;  %1520 = vst [vmem:[%s2976_s9] sm:$0xff] %v1518_v53 }
 0x4f5   : > { %1509 = vst [vmem:[%s2973_s17 + $0x8] sm:$0xff] %v1507_v51  ;;  %1521 = vst [vmem:[%s2976_s9 + $0x8] sm:$0xff] %v1519_v54 }
 0x4f6 PF: > { %s3438_s15 = sld [smem:[#allocation30_spill]]  ;;  %s3439_s1 = sld [smem:[#allocation34_spill]] }
 0x4f7   : > { %s3440_s20 = sld [smem:[#allocation45_spill]]  ;;  %s1541_s10 = sshll.u32 %s2973_s17, 4  ;;  %s3237_s10 = int_to_ptr.vmem [resolvable:$true] %s1541_s10 }
 0x4f8   : > { %s1523_s19 = scalar_lea.sflag [#allocation7], %s2932_s11  ;;  %s2261_s12 = scalar_lea.vmem %s3237_s10, 256 }
 0x4f9   : > { %p2262_p2 = scmp.ne.s32.totalorder %s3237_s10, %s2261_s12  ;;  %s2448_s7 = smov [#allocation17]  }
 0x4fa   : > { %s2265_s3 = sshll.u32 %s2448_s7, 4  ;;  %s2266_s3 = int_to_ptr.vmem [resolvable:$false] %s2265_s3 }
 0x4fb   : > { %s2267_s23 = scalar_lea.vmem %s2266_s3, 512  ;;  %p2268_p7 = scmp.lt.s32.totalorder %s3237_s10, %s2266_s3 }
 0x4fc   : > { %s1876_s2 = sshll.u32 %s3438_s15, 8  ;;  %p3441_p3 = scmp.ne.s32.totalorder %s3439_s1, 0 }
 0x4fd   : > { %s3234_s8 = scalar_lea.hbm %s3440_s20, %s1876_s2  ;;  %p2269_p5 = scmp.lt.s32.totalorder %s2267_s23, %s2261_s12 }
 0x4fe   : > { %p2263_p0 = pnand %p2262_p2, %p3441_p3 }
 0x4ff   : > { %p2270_p12 = por %p2269_p5, %p2268_p7 }
 0x500   : > { %p2264_p9 = pneg %p2263_p0 }
 0x502   : > { %p2271_p6 = pnand %p2270_p12, %p2264_p9 }
 0x504   : > { %2274 = shalt.err (!%p2271_p6)
}
 0x505   : > { %s2275_s17 = scalar_lea.hbm %s3234_s8, 256  ;;  %s2279_s18 = scalar_lea.hbm %s3440_s20, 512 }
 0x506   : > { %p2276_p4 = scmp.ne.s32.totalorder %s3234_s8, %s2275_s17  ;;  %p2280_p8 = scmp.lt.u32.totalorder %s3234_s8, %s3440_s20 }
 0x507   : > { %p2281_p1 = scmp.lt.u32.totalorder %s2279_s18, %s2275_s17  ;;  %p2283_p2 = scmp.lt.u32.totalorder %s2275_s17, %s3234_s8 }
 0x508   : > { %p2277_p10 = pnand %p2276_p4, %p3441_p3 }
 0x509   : > { %p2282_p13 = por %p2281_p1, %p2280_p8 }
 0x50a   : > { %p2278_p11 = pneg %p2277_p10 }
 0x50b   : > { %p2284_p0 = por %p2283_p2, %p2282_p13 }
 0x50d   : > { %p2285_p9 = pnand %p2284_p0, %p2278_p11 }
 0x50f   : > { %2288 = shalt.err (!%p2285_p9)
}
 0x510   : > { %s2449_s12 = smov 128   ;;  %s2450_s3 = smov 8  }
 0x511   : > { %1894 = dma.vmem_to_hbm [thread:$0]  (%p3441_p3), %s3237_s10, 256, %s3234_s8, %s1523_s19, %s2449_s12, %s2449_s12, %s2450_s3  }
 0x512   : > { %s3442_s29 = sld [smem:[#allocation46_spill]]  ;;  %s1557_s22 = sshll.u32 %s2976_s9, 4  ;;  %s3274_s22 = int_to_ptr.vmem [resolvable:$true] %s1557_s22 }
 0x513   : > { %s1528_s7 = scalar_lea.sflag [#allocation19], %s2932_s11  ;;  %s2289_s4 = scalar_lea.vmem %s3274_s22, 256 }
 0x514   : > { %p2290_p7 = scmp.ne.s32.totalorder %s3274_s22, %s2289_s4  ;;  %s2451_s5 = smov [#allocation18]  }
 0x515   : > { %s2293_s8 = sshll.u32 %s2451_s5, 4  ;;  %s2294_s8 = int_to_ptr.vmem [resolvable:$false] %s2293_s8 }
 0x516   : > { %p2291_p5 = pnand %p2290_p7, %p3441_p3  ;;  %s2295_s15 = scalar_lea.vmem %s2294_s8, 512 }
 0x517   : > { %p2296_p6 = scmp.lt.s32.totalorder %s3274_s22, %s2294_s8  ;;  %p2297_p4 = scmp.lt.s32.totalorder %s2295_s15, %s2289_s4 }
 0x518   : > { %s3443_s18 = smov %s3442_s29  ;;  %s3271_s26 = scalar_lea.hbm %s3442_s29, %s1876_s2 }
 0x519   : > { %p2292_p12 = pneg %p2291_p5  ;;  %p2298_p10 = por %p2297_p4, %p2296_p6 }
 0x51b   : > { %p2299_p11 = pnand %p2298_p10, %p2292_p12 }
 0x51d   : > { %2302 = shalt.err (!%p2299_p11)
}
 0x51e   : > { %s2303_s9 = scalar_lea.hbm %s3271_s26, 256  ;;  %s2307_s5 = scalar_lea.hbm %s3443_s18, 512 }
 0x51f   : > { %p2304_p8 = scmp.ne.s32.totalorder %s3271_s26, %s2303_s9  ;;  %p2308_p2 = scmp.lt.u32.totalorder %s3271_s26, %s3443_s18 }
 0x520   : > { %p2309_p0 = scmp.lt.u32.totalorder %s2307_s5, %s2303_s9  ;;  %p2311_p7 = scmp.lt.u32.totalorder %s2303_s9, %s3271_s26 }
 0x521   : > { %p2305_p1 = pnand %p2304_p8, %p3441_p3 }
 0x522   : > { %p2310_p9 = por %p2309_p0, %p2308_p2 }
 0x523   : > { %p2306_p13 = pneg %p2305_p1 }
 0x524   : > { %p2312_p5 = por %p2311_p7, %p2310_p9 }
 0x526   : > { %p2313_p12 = pnand %p2312_p5, %p2306_p13 }
 0x528   : > { %2316 = shalt.err (!%p2313_p12)
}
 0x529   : > { %1895 = dma.vmem_to_hbm [thread:$0]  (%p3441_p3), %s3274_s22, 256, %s3271_s26, %s1528_s7, %s2449_s12, %s2449_s12, %s2450_s3  }
 0x52a PF: > { %s3444_s4 = sld [smem:[#allocation28_spill]]  ;;  %s3445_s17 = sld [smem:[#allocation33_spill]] }
 0x52b   : > { %p1931_p6 = scmp.ge.s32.totalorder %s2435_s14, 2 }
 0x530   : > { %s1572_s29 = sand.u32 1, %s3444_s4   ;;  %p3446_p4 = scmp.ne.s32.totalorder %s3445_s17, 0 }
 0x531   : > { %s1573_s8 = scalar_lea.sflag [#allocation7], %s1572_s29 }
 0x532   : > { %p1922_p10 = pnand %p1931_p6, %p3446_p4 }
 0x534   : > { %2386 = dma.done.wait (!%p1922_p10), %s1573_s8, 256  }
 0x535   : > { %2388 = vsyncadd (!%p1922_p10), %s1573_s8, 4294967040  ;;  %s1582_s1 = scalar_lea.sflag [#allocation19], %s1572_s29 }
 0x536   : > { %2390 = dma.done.wait (!%p1922_p10), %s1582_s1, 256  }
 0x537   : > { %2392 = vsyncadd (!%p1922_p10), %s1582_s1, 4294967040  ;;  %s42_s14 = sadd.s32 1, %s2435_s14   ;;  %s3447_s11 = sld [smem:[#allocation35_spill]] }
 0x538   : > { %p39_p11 = scmp.ge.s32.totalorder %s42_s14, 6   ;;  %s3448_s23 = smov %s2399_s24 }
 0x539   : > { %s3449_s24 = smov %s2403_s25  ;;  %s3450_s25 = smov %s2850_s28 }
 0x53a   : > { %s3451_s26 = smov %s2411_s0  ;;  %s3452_s0 = smov %s2415_s27 }
 0x53b   : > { %s3453_s27 = smov %s2847_s21  ;;  %s3454_s28 = smov %s2427_s30 }
 0x53c   : > { %s3455_s29 = smov %s2431_s13  ;;  %s3457_s13 = smov %s3463_s16 }
 0x53d   : > { %s3456_s30 = smov %s3447_s11  ;;  %41 = sbr.rel (!%p39_p11) target bundleno = 30 (0x1e), region = 199 }
 0x544   :  { %1587 = vsyncpa [#allocation6], 1 }
 0x545   :  { %1589 = vsyncpa [#allocation6 + $0x1], 1 }
 0x546   :  { %1590 = vsyncpa [#allocation9], 1 }
 0x547   :  { %1592 = vsyncpa [#allocation9 + $0x1], 1 }
 0x548   :  { %1593 = vsyncpa [#allocation12], 1 }
 0x549   :  { %1595 = vsyncpa [#allocation12 + $0x1], 1 }
 0x54a   :  { %1596 = vsyncpa [#allocation15], 1 }
 0x54b   :  { %1598 = vsyncpa [#allocation15 + $0x1], 1 }
 0x54c   :  { %1599 = vsyncpa [#allocation7], 1 }
 0x54d   :  { %1601 = vsyncpa [#allocation7 + $0x1], 1 }
 0x54e   :  { %1602 = vsyncpa [#allocation19], 1 }
 0x54f   :  { %1604 = vsyncpa [#allocation19 + $0x1], 1 }

</bundles_post_ra>
